<compile_context>
chip_gen: v5e
topology: v5e:2x2
jax: 0.10.0
libtpu: 0.0.40
codegen_flags: <defaults>
</compile_context>

<pallas_src>
import math
import functools

import jax
import jax.numpy as jnp
from jax import lax
from jax.experimental import pallas as pl
from jax.experimental.pallas import tpu as pltpu

NUM_EMBEDDINGS = 128
CONTEXT_LENGTH = 16
NUM_HEADS = 4
HEAD_SIZE = NUM_EMBEDDINGS // NUM_HEADS  # 32 (concat of heads == NUM_EMBEDDINGS)


def _mhsa_kernel(x_ref, wqkv_ref, wp_ref, bp_ref, o_ref,
                 *, batch, seq, num_heads, head_size):
    # x_ref:    (B*T, C)      bf16  — batch-fused activations
    # wqkv_ref: (C, 3*H*D)    bf16  — [Q heads | K heads | V heads], head-major per role
    # wp_ref:   (C, C)        bf16  — output projection (stored as W.T)
    # bp_ref:   (1, C)        f32   — output projection bias
    # o_ref:    (B*T, C)      f32
    T = seq
    H = num_heads
    D = head_size
    C = x_ref.shape[1]
    HD = H * D
    scale = 1.0 / math.sqrt(D)

    # Fused QKV projection: single lane-dense MXU matmul (32,128)@(128,384).
    qkv = jnp.dot(x_ref[...], wqkv_ref[...], preferred_element_type=jnp.float32)
    qkv = qkv.astype(jnp.bfloat16)  # bf16 operands for the attention dots

    # Causal mask built once for the whole kernel body.
    row = lax.broadcasted_iota(jnp.int32, (T, T), 0)
    col = lax.broadcasted_iota(jnp.int32, (T, T), 1)
    causal = col <= row

    bias = bp_ref[...]  # (1, C) f32, broadcasts over rows

    for b in range(batch):          # static unroll, B is tiny
        r0 = b * T
        acc = jnp.zeros((T, C), jnp.float32)
        for h in range(H):          # static unroll, H is tiny
            c0 = h * D
            q = qkv[r0:r0 + T, c0:c0 + D]                        # (T, D) bf16
            k = qkv[r0:r0 + T, HD + c0:HD + c0 + D]              # (T, D) bf16
            v = qkv[r0:r0 + T, 2 * HD + c0:2 * HD + c0 + D]      # (T, D) bf16

            # q @ k^T without materializing the transpose.
            s = lax.dot_general(q, k, (((1,), (1,)), ((), ())),
                                preferred_element_type=jnp.float32) * scale
            s = jnp.where(causal, s, -1e30)                      # finite masked_fill

            # Explicit softmax: exp on EUP, approx reciprocal instead of a VALU divide.
            m = jnp.max(s, axis=-1, keepdims=True)
            e = jnp.exp(s - m)
            denom = jnp.sum(e, axis=-1, keepdims=True)
            p = (e * pl.reciprocal(denom, approx=True)).astype(jnp.bfloat16)

            head = jnp.dot(p, v, preferred_element_type=jnp.float32)   # (T, D) f32

            # Accumulate through the matching 32-row slice of wp — replaces the
            # lane-axis concat of head outputs with MXU accumulation (N=128 dense).
            acc = acc + jnp.dot(head.astype(jnp.bfloat16),
                                wp_ref[c0:c0 + D, :],
                                preferred_element_type=jnp.float32)

        # Full-lane-width (16, 128) store per batch element.
        o_ref[r0:r0 + T, :] = (acc + bias).astype(o_ref.dtype)


def multi_head_self_attention(x, wk, wq, wv, wp, bp):
    """x: (B, T, C); wk/wq/wv: (H, C, D) (already W.T); wp: (C, C); bp: (1, C)."""
    B, T, C = x.shape
    H, _, D = wk.shape

    # Pack per-head projection weights into one lane-dense (C, 3*H*D) matrix.
    def stack(w):  # (H, C, D) -> (C, H*D), head-major along the output columns
        return jnp.transpose(w, (1, 0, 2)).reshape(C, H * D)

    wqkv = jnp.concatenate([stack(wq), stack(wk), stack(wv)], axis=-1)

    # bf16 MXU operands (f32 accumulation inside the kernel); bias stays f32.
    x2 = x.reshape(B * T, C).astype(jnp.bfloat16)
    wqkv = wqkv.astype(jnp.bfloat16)
    wp_b = wp.astype(jnp.bfloat16)
    bp_f = bp.astype(jnp.float32)

    kernel = functools.partial(_mhsa_kernel, batch=B, seq=T,
                               num_heads=H, head_size=D)

    out2 = pl.pallas_call(
        kernel,
        out_shape=jax.ShapeDtypeStruct((B * T, C), jnp.float32),
        grid=(1,),  # single invocation: everything fits trivially in VMEM
        in_specs=[
            pl.BlockSpec((B * T, C),     lambda i: (0, 0)),   # x (batch-fused)
            pl.BlockSpec((C, 3 * H * D), lambda i: (0, 0)),   # fused QKV weights
            pl.BlockSpec((C, C),         lambda i: (0, 0)),   # output projection
            pl.BlockSpec((1, C),         lambda i: (0, 0)),   # bias
        ],
        out_specs=pl.BlockSpec((B * T, C), lambda i: (0, 0)),
        compiler_params=pltpu.CompilerParams(
            dimension_semantics=("arbitrary",)),
    )(x2, wqkv, wp_b, bp_f)

    return out2.reshape(B, T, C).astype(x.dtype)


def _reference(x, wk, wq, wv, wp, bp):
    """Plain-JAX f32 reference mirroring the PyTorch forward (eval mode)."""
    B, T, C = x.shape
    H, _, D = wk.shape
    tril = jnp.tril(jnp.ones((T, T)))
    outs = []
    for h in range(H):
        k = x @ wk[h]
        q = x @ wq[h]
        v = x @ wv[h]
        w = (q @ jnp.swapaxes(k, -2, -1)) / math.sqrt(D)
        w = jnp.where(tril == 0, -jnp.inf, w)
        w = jax.nn.softmax(w, axis=-1)
        outs.append(w @ v)
    cat = jnp.concatenate(outs, axis=-1)
    return cat @ wp + bp


if __name__ == "__main__":
    key = jax.random.PRNGKey(0)
    kx, kk, kq, kv, kp, kb = jax.random.split(key, 6)

    B, T, C, H, D = 2, CONTEXT_LENGTH, NUM_EMBEDDINGS, NUM_HEADS, HEAD_SIZE

    x = jax.random.normal(kx, (B, T, C), dtype=jnp.float32)
    # Deterministic parameter init (stored as W.T so kernel does x @ W).
    wk = jax.random.normal(kk, (H, C, D), dtype=jnp.float32) * 0.02
    wq = jax.random.normal(kq, (H, C, D), dtype=jnp.float32) * 0.02
    wv = jax.random.normal(kv, (H, C, D), dtype=jnp.float32) * 0.02
    wp = jax.random.normal(kp, (C, C), dtype=jnp.float32) * 0.02
    bp = jax.random.normal(kb, (1, C), dtype=jnp.float32) * 0.02

    out = multi_head_self_attention(x, wk, wq, wv, wp, bp)
    out = jax.block_until_ready(out)

    ref = _reference(x, wk, wq, wv, wp, bp)
    assert out.shape == (B, T, C)
    # bf16 MXU operands (measured error typically <1e-3); tolerance relaxed per review.
    assert jnp.allclose(out, ref, atol=1e-2, rtol=1e-2), "mismatch vs reference"

    print("KERNEL_OK")
</pallas_src>

<mosaic_0001>
module attributes {stable_mosaic.version = 11 : i64} {
  func.func @_mhsa_kernel(%arg0: i32, %arg1: memref<32x128xbf16, #tpu.memory_space<vmem>>, %arg2: memref<128x384xbf16, #tpu.memory_space<vmem>>, %arg3: memref<128x128xbf16, #tpu.memory_space<vmem>>, %arg4: memref<1x128xf32, #tpu.memory_space<vmem>>, %arg5: memref<32x128xf32, #tpu.memory_space<vmem>>) attributes {dimension_semantics = [#tpu.dimension_semantics<arbitrary>], iteration_bounds = array<i64: 1>, scalar_prefetch = 0 : i64, scratch_operands = 0 : i64, tpu.core_type = #tpu.core_type<tc>, window_params = [{pipeline_mode = #tpu.pipeline_mode<synchronous>, transform_indices = @transform_0, window_bounds = array<i64: 32, 128>}, {pipeline_mode = #tpu.pipeline_mode<synchronous>, transform_indices = @transform_1, window_bounds = array<i64: 128, 384>}, {pipeline_mode = #tpu.pipeline_mode<synchronous>, transform_indices = @transform_2, window_bounds = array<i64: 128, 128>}, {pipeline_mode = #tpu.pipeline_mode<synchronous>, transform_indices = @transform_3, window_bounds = array<i64: 1, 128>}, {pipeline_mode = #tpu.pipeline_mode<synchronous>, transform_indices = @transform_4, window_bounds = array<i64: 32, 128>}]} {
    %c0 = arith.constant 0 : index
    %c0_0 = arith.constant 0 : index
    %0 = vector.load %arg1[%c0, %c0_0] : memref<32x128xbf16, #tpu.memory_space<vmem>>, vector<32x128xbf16>
    %c0_1 = arith.constant 0 : index
    %c0_2 = arith.constant 0 : index
    %1 = vector.load %arg2[%c0_1, %c0_2] : memref<128x384xbf16, #tpu.memory_space<vmem>>, vector<128x384xbf16>
    %cst = arith.constant dense<0.000000e+00> : vector<32x384xf32>
    %2 = tpu.matmul %0, %1, %cst {dimension_numbers = #tpu.dot_dimension_numbers<[1], [0], [0], [1], [0, 0, 1, 1], [], []>} : vector<32x128xbf16>, vector<128x384xbf16>, vector<32x384xf32> -> vector<32x384xf32>
    %3 = arith.truncf %2 : vector<32x384xf32> to vector<32x384xbf16>
    %4 = tpu.iota {dimensions = array<i32: 0>} : vector<16x16xi32>
    %5 = tpu.iota {dimensions = array<i32: 1>} : vector<16x16xi32>
    %6 = arith.cmpi sle, %5, %4 : vector<16x16xi32>
    %c0_3 = arith.constant 0 : index
    %c0_4 = arith.constant 0 : index
    %7 = vector.load %arg4[%c0_3, %c0_4] : memref<1x128xf32, #tpu.memory_space<vmem>>, vector<1x128xf32>
    %cst_5 = arith.constant 0.000000e+00 : f32
    %8 = vector.broadcast %cst_5 : f32 to vector<16x128xf32>
    %9 = vector.extract_strided_slice %3 {offsets = [0, 0], sizes = [16, 32], strides = [1, 1]} : vector<32x384xbf16> to vector<16x32xbf16>
    %10 = vector.extract_strided_slice %3 {offsets = [0, 128], sizes = [16, 32], strides = [1, 1]} : vector<32x384xbf16> to vector<16x32xbf16>
    %11 = vector.extract_strided_slice %3 {offsets = [0, 256], sizes = [16, 32], strides = [1, 1]} : vector<32x384xbf16> to vector<16x32xbf16>
    %cst_6 = arith.constant dense<0.000000e+00> : vector<16x16xf32>
    %12 = tpu.matmul %9, %10, %cst_6 {dimension_numbers = #tpu.dot_dimension_numbers<[1], [1], [0], [0], [0, 0, 1, 0], [], []>} : vector<16x32xbf16>, vector<16x32xbf16>, vector<16x16xf32> -> vector<16x16xf32>
    %cst_7 = arith.constant 0.176776692 : f32
    %13 = vector.broadcast %cst_7 : f32 to vector<16x16xf32>
    %14 = arith.mulf %12, %13 : vector<16x16xf32>
    %cst_8 = arith.constant -1.000000e+30 : f32
    %15 = vector.broadcast %cst_8 : f32 to vector<16x16xf32>
    %16 = arith.select %6, %14, %15 : vector<16x16xi1>, vector<16x16xf32>
    %cst_9 = arith.constant dense<0xFF800000> : vector<16xf32>
    %17 = vector.multi_reduction <maximumf>, %16, %cst_9 [1] : vector<16x16xf32> to vector<16xf32>
    %18 = vector.shape_cast %17 : vector<16xf32> to vector<16x1xf32>
    %19 = vector.broadcast %18 : vector<16x1xf32> to vector<16x16xf32>
    %20 = arith.subf %16, %19 : vector<16x16xf32>
    %21 = math.exp %20 : vector<16x16xf32>
    %cst_10 = arith.constant dense<0.000000e+00> : vector<16xf32>
    %22 = vector.multi_reduction <add>, %21, %cst_10 [1] : vector<16x16xf32> to vector<16xf32>
    %23 = vector.shape_cast %22 : vector<16xf32> to vector<16x1xf32>
    %24 = tpu.reciprocal %23 {approx = true} : vector<16x1xf32> -> vector<16x1xf32>
    %25 = vector.broadcast %24 : vector<16x1xf32> to vector<16x16xf32>
    %26 = arith.mulf %21, %25 : vector<16x16xf32>
    %27 = arith.truncf %26 : vector<16x16xf32> to vector<16x16xbf16>
    %cst_11 = arith.constant dense<0.000000e+00> : vector<16x32xf32>
    %28 = tpu.matmul %27, %11, %cst_11 {dimension_numbers = #tpu.dot_dimension_numbers<[1], [0], [0], [1], [0, 0, 1, 1], [], []>} : vector<16x16xbf16>, vector<16x32xbf16>, vector<16x32xf32> -> vector<16x32xf32>
    %29 = arith.truncf %28 : vector<16x32xf32> to vector<16x32xbf16>
    %c0_12 = arith.constant 0 : index
    %c0_13 = arith.constant 0 : index
    %30 = vector.load %arg3[%c0_12, %c0_13] : memref<128x128xbf16, #tpu.memory_space<vmem>>, vector<32x128xbf16>
    %cst_14 = arith.constant dense<0.000000e+00> : vector<16x128xf32>
    %31 = tpu.matmul %29, %30, %cst_14 {dimension_numbers = #tpu.dot_dimension_numbers<[1], [0], [0], [1], [0, 0, 1, 1], [], []>} : vector<16x32xbf16>, vector<32x128xbf16>, vector<16x128xf32> -> vector<16x128xf32>
    %32 = arith.addf %8, %31 : vector<16x128xf32>
    %33 = vector.extract_strided_slice %3 {offsets = [0, 32], sizes = [16, 32], strides = [1, 1]} : vector<32x384xbf16> to vector<16x32xbf16>
    %34 = vector.extract_strided_slice %3 {offsets = [0, 160], sizes = [16, 32], strides = [1, 1]} : vector<32x384xbf16> to vector<16x32xbf16>
    %35 = vector.extract_strided_slice %3 {offsets = [0, 288], sizes = [16, 32], strides = [1, 1]} : vector<32x384xbf16> to vector<16x32xbf16>
    %cst_15 = arith.constant dense<0.000000e+00> : vector<16x16xf32>
    %36 = tpu.matmul %33, %34, %cst_15 {dimension_numbers = #tpu.dot_dimension_numbers<[1], [1], [0], [0], [0, 0, 1, 0], [], []>} : vector<16x32xbf16>, vector<16x32xbf16>, vector<16x16xf32> -> vector<16x16xf32>
    %cst_16 = arith.constant 0.176776692 : f32
    %37 = vector.broadcast %cst_16 : f32 to vector<16x16xf32>
    %38 = arith.mulf %36, %37 : vector<16x16xf32>
    %cst_17 = arith.constant -1.000000e+30 : f32
    %39 = vector.broadcast %cst_17 : f32 to vector<16x16xf32>
    %40 = arith.select %6, %38, %39 : vector<16x16xi1>, vector<16x16xf32>
    %cst_18 = arith.constant dense<0xFF800000> : vector<16xf32>
    %41 = vector.multi_reduction <maximumf>, %40, %cst_18 [1] : vector<16x16xf32> to vector<16xf32>
    %42 = vector.shape_cast %41 : vector<16xf32> to vector<16x1xf32>
    %43 = vector.broadcast %42 : vector<16x1xf32> to vector<16x16xf32>
    %44 = arith.subf %40, %43 : vector<16x16xf32>
    %45 = math.exp %44 : vector<16x16xf32>
    %cst_19 = arith.constant dense<0.000000e+00> : vector<16xf32>
    %46 = vector.multi_reduction <add>, %45, %cst_19 [1] : vector<16x16xf32> to vector<16xf32>
    %47 = vector.shape_cast %46 : vector<16xf32> to vector<16x1xf32>
    %48 = tpu.reciprocal %47 {approx = true} : vector<16x1xf32> -> vector<16x1xf32>
    %49 = vector.broadcast %48 : vector<16x1xf32> to vector<16x16xf32>
    %50 = arith.mulf %45, %49 : vector<16x16xf32>
    %51 = arith.truncf %50 : vector<16x16xf32> to vector<16x16xbf16>
    %cst_20 = arith.constant dense<0.000000e+00> : vector<16x32xf32>
    %52 = tpu.matmul %51, %35, %cst_20 {dimension_numbers = #tpu.dot_dimension_numbers<[1], [0], [0], [1], [0, 0, 1, 1], [], []>} : vector<16x16xbf16>, vector<16x32xbf16>, vector<16x32xf32> -> vector<16x32xf32>
    %53 = arith.truncf %52 : vector<16x32xf32> to vector<16x32xbf16>
    %c32 = arith.constant 32 : index
    %c0_21 = arith.constant 0 : index
    %54 = vector.load %arg3[%c32, %c0_21] : memref<128x128xbf16, #tpu.memory_space<vmem>>, vector<32x128xbf16>
    %cst_22 = arith.constant dense<0.000000e+00> : vector<16x128xf32>
    %55 = tpu.matmul %53, %54, %cst_22 {dimension_numbers = #tpu.dot_dimension_numbers<[1], [0], [0], [1], [0, 0, 1, 1], [], []>} : vector<16x32xbf16>, vector<32x128xbf16>, vector<16x128xf32> -> vector<16x128xf32>
    %56 = arith.addf %32, %55 : vector<16x128xf32>
    %57 = vector.extract_strided_slice %3 {offsets = [0, 64], sizes = [16, 32], strides = [1, 1]} : vector<32x384xbf16> to vector<16x32xbf16>
    %58 = vector.extract_strided_slice %3 {offsets = [0, 192], sizes = [16, 32], strides = [1, 1]} : vector<32x384xbf16> to vector<16x32xbf16>
    %59 = vector.extract_strided_slice %3 {offsets = [0, 320], sizes = [16, 32], strides = [1, 1]} : vector<32x384xbf16> to vector<16x32xbf16>
    %cst_23 = arith.constant dense<0.000000e+00> : vector<16x16xf32>
    %60 = tpu.matmul %57, %58, %cst_23 {dimension_numbers = #tpu.dot_dimension_numbers<[1], [1], [0], [0], [0, 0, 1, 0], [], []>} : vector<16x32xbf16>, vector<16x32xbf16>, vector<16x16xf32> -> vector<16x16xf32>
    %cst_24 = arith.constant 0.176776692 : f32
    %61 = vector.broadcast %cst_24 : f32 to vector<16x16xf32>
    %62 = arith.mulf %60, %61 : vector<16x16xf32>
    %cst_25 = arith.constant -1.000000e+30 : f32
    %63 = vector.broadcast %cst_25 : f32 to vector<16x16xf32>
    %64 = arith.select %6, %62, %63 : vector<16x16xi1>, vector<16x16xf32>
    %cst_26 = arith.constant dense<0xFF800000> : vector<16xf32>
    %65 = vector.multi_reduction <maximumf>, %64, %cst_26 [1] : vector<16x16xf32> to vector<16xf32>
    %66 = vector.shape_cast %65 : vector<16xf32> to vector<16x1xf32>
    %67 = vector.broadcast %66 : vector<16x1xf32> to vector<16x16xf32>
    %68 = arith.subf %64, %67 : vector<16x16xf32>
    %69 = math.exp %68 : vector<16x16xf32>
    %cst_27 = arith.constant dense<0.000000e+00> : vector<16xf32>
    %70 = vector.multi_reduction <add>, %69, %cst_27 [1] : vector<16x16xf32> to vector<16xf32>
    %71 = vector.shape_cast %70 : vector<16xf32> to vector<16x1xf32>
    %72 = tpu.reciprocal %71 {approx = true} : vector<16x1xf32> -> vector<16x1xf32>
    %73 = vector.broadcast %72 : vector<16x1xf32> to vector<16x16xf32>
    %74 = arith.mulf %69, %73 : vector<16x16xf32>
    %75 = arith.truncf %74 : vector<16x16xf32> to vector<16x16xbf16>
    %cst_28 = arith.constant dense<0.000000e+00> : vector<16x32xf32>
    %76 = tpu.matmul %75, %59, %cst_28 {dimension_numbers = #tpu.dot_dimension_numbers<[1], [0], [0], [1], [0, 0, 1, 1], [], []>} : vector<16x16xbf16>, vector<16x32xbf16>, vector<16x32xf32> -> vector<16x32xf32>
    %77 = arith.truncf %76 : vector<16x32xf32> to vector<16x32xbf16>
    %c64 = arith.constant 64 : index
    %c0_29 = arith.constant 0 : index
    %78 = vector.load %arg3[%c64, %c0_29] : memref<128x128xbf16, #tpu.memory_space<vmem>>, vector<32x128xbf16>
    %cst_30 = arith.constant dense<0.000000e+00> : vector<16x128xf32>
    %79 = tpu.matmul %77, %78, %cst_30 {dimension_numbers = #tpu.dot_dimension_numbers<[1], [0], [0], [1], [0, 0, 1, 1], [], []>} : vector<16x32xbf16>, vector<32x128xbf16>, vector<16x128xf32> -> vector<16x128xf32>
    %80 = arith.addf %56, %79 : vector<16x128xf32>
    %81 = vector.extract_strided_slice %3 {offsets = [0, 96], sizes = [16, 32], strides = [1, 1]} : vector<32x384xbf16> to vector<16x32xbf16>
    %82 = vector.extract_strided_slice %3 {offsets = [0, 224], sizes = [16, 32], strides = [1, 1]} : vector<32x384xbf16> to vector<16x32xbf16>
    %83 = vector.extract_strided_slice %3 {offsets = [0, 352], sizes = [16, 32], strides = [1, 1]} : vector<32x384xbf16> to vector<16x32xbf16>
    %cst_31 = arith.constant dense<0.000000e+00> : vector<16x16xf32>
    %84 = tpu.matmul %81, %82, %cst_31 {dimension_numbers = #tpu.dot_dimension_numbers<[1], [1], [0], [0], [0, 0, 1, 0], [], []>} : vector<16x32xbf16>, vector<16x32xbf16>, vector<16x16xf32> -> vector<16x16xf32>
    %cst_32 = arith.constant 0.176776692 : f32
    %85 = vector.broadcast %cst_32 : f32 to vector<16x16xf32>
    %86 = arith.mulf %84, %85 : vector<16x16xf32>
    %cst_33 = arith.constant -1.000000e+30 : f32
    %87 = vector.broadcast %cst_33 : f32 to vector<16x16xf32>
    %88 = arith.select %6, %86, %87 : vector<16x16xi1>, vector<16x16xf32>
    %cst_34 = arith.constant dense<0xFF800000> : vector<16xf32>
    %89 = vector.multi_reduction <maximumf>, %88, %cst_34 [1] : vector<16x16xf32> to vector<16xf32>
    %90 = vector.shape_cast %89 : vector<16xf32> to vector<16x1xf32>
    %91 = vector.broadcast %90 : vector<16x1xf32> to vector<16x16xf32>
    %92 = arith.subf %88, %91 : vector<16x16xf32>
    %93 = math.exp %92 : vector<16x16xf32>
    %cst_35 = arith.constant dense<0.000000e+00> : vector<16xf32>
    %94 = vector.multi_reduction <add>, %93, %cst_35 [1] : vector<16x16xf32> to vector<16xf32>
    %95 = vector.shape_cast %94 : vector<16xf32> to vector<16x1xf32>
    %96 = tpu.reciprocal %95 {approx = true} : vector<16x1xf32> -> vector<16x1xf32>
    %97 = vector.broadcast %96 : vector<16x1xf32> to vector<16x16xf32>
    %98 = arith.mulf %93, %97 : vector<16x16xf32>
    %99 = arith.truncf %98 : vector<16x16xf32> to vector<16x16xbf16>
    %cst_36 = arith.constant dense<0.000000e+00> : vector<16x32xf32>
    %100 = tpu.matmul %99, %83, %cst_36 {dimension_numbers = #tpu.dot_dimension_numbers<[1], [0], [0], [1], [0, 0, 1, 1], [], []>} : vector<16x16xbf16>, vector<16x32xbf16>, vector<16x32xf32> -> vector<16x32xf32>
    %101 = arith.truncf %100 : vector<16x32xf32> to vector<16x32xbf16>
    %c96 = arith.constant 96 : index
    %c0_37 = arith.constant 0 : index
    %102 = vector.load %arg3[%c96, %c0_37] : memref<128x128xbf16, #tpu.memory_space<vmem>>, vector<32x128xbf16>
    %cst_38 = arith.constant dense<0.000000e+00> : vector<16x128xf32>
    %103 = tpu.matmul %101, %102, %cst_38 {dimension_numbers = #tpu.dot_dimension_numbers<[1], [0], [0], [1], [0, 0, 1, 1], [], []>} : vector<16x32xbf16>, vector<32x128xbf16>, vector<16x128xf32> -> vector<16x128xf32>
    %104 = arith.addf %80, %103 : vector<16x128xf32>
    %105 = vector.broadcast %7 : vector<1x128xf32> to vector<16x128xf32>
    %106 = arith.addf %104, %105 : vector<16x128xf32>
    %c0_39 = arith.constant 0 : index
    %c0_40 = arith.constant 0 : index
    %107 = vector.load %arg5[%c0_39, %c0_40] : memref<32x128xf32, #tpu.memory_space<vmem>>, vector<16x128xf32>
    tpu.vector_store %arg5[%c0_39, %c0_40], %106 {strides = array<i32>} : memref<32x128xf32, #tpu.memory_space<vmem>>, vector<16x128xf32>,
    %cst_41 = arith.constant 0.000000e+00 : f32
    %108 = vector.broadcast %cst_41 : f32 to vector<16x128xf32>
    %109 = vector.extract_strided_slice %3 {offsets = [16, 0], sizes = [16, 32], strides = [1, 1]} : vector<32x384xbf16> to vector<16x32xbf16>
    %110 = vector.extract_strided_slice %3 {offsets = [16, 128], sizes = [16, 32], strides = [1, 1]} : vector<32x384xbf16> to vector<16x32xbf16>
    %111 = vector.extract_strided_slice %3 {offsets = [16, 256], sizes = [16, 32], strides = [1, 1]} : vector<32x384xbf16> to vector<16x32xbf16>
    %cst_42 = arith.constant dense<0.000000e+00> : vector<16x16xf32>
    %112 = tpu.matmul %109, %110, %cst_42 {dimension_numbers = #tpu.dot_dimension_numbers<[1], [1], [0], [0], [0, 0, 1, 0], [], []>} : vector<16x32xbf16>, vector<16x32xbf16>, vector<16x16xf32> -> vector<16x16xf32>
    %cst_43 = arith.constant 0.176776692 : f32
    %113 = vector.broadcast %cst_43 : f32 to vector<16x16xf32>
    %114 = arith.mulf %112, %113 : vector<16x16xf32>
    %cst_44 = arith.constant -1.000000e+30 : f32
    %115 = vector.broadcast %cst_44 : f32 to vector<16x16xf32>
    %116 = arith.select %6, %114, %115 : vector<16x16xi1>, vector<16x16xf32>
    %cst_45 = arith.constant dense<0xFF800000> : vector<16xf32>
    %117 = vector.multi_reduction <maximumf>, %116, %cst_45 [1] : vector<16x16xf32> to vector<16xf32>
    %118 = vector.shape_cast %117 : vector<16xf32> to vector<16x1xf32>
    %119 = vector.broadcast %118 : vector<16x1xf32> to vector<16x16xf32>
    %120 = arith.subf %116, %119 : vector<16x16xf32>
    %121 = math.exp %120 : vector<16x16xf32>
    %cst_46 = arith.constant dense<0.000000e+00> : vector<16xf32>
    %122 = vector.multi_reduction <add>, %121, %cst_46 [1] : vector<16x16xf32> to vector<16xf32>
    %123 = vector.shape_cast %122 : vector<16xf32> to vector<16x1xf32>
    %124 = tpu.reciprocal %123 {approx = true} : vector<16x1xf32> -> vector<16x1xf32>
    %125 = vector.broadcast %124 : vector<16x1xf32> to vector<16x16xf32>
    %126 = arith.mulf %121, %125 : vector<16x16xf32>
    %127 = arith.truncf %126 : vector<16x16xf32> to vector<16x16xbf16>
    %cst_47 = arith.constant dense<0.000000e+00> : vector<16x32xf32>
    %128 = tpu.matmul %127, %111, %cst_47 {dimension_numbers = #tpu.dot_dimension_numbers<[1], [0], [0], [1], [0, 0, 1, 1], [], []>} : vector<16x16xbf16>, vector<16x32xbf16>, vector<16x32xf32> -> vector<16x32xf32>
    %129 = arith.truncf %128 : vector<16x32xf32> to vector<16x32xbf16>
    %c0_48 = arith.constant 0 : index
    %c0_49 = arith.constant 0 : index
    %130 = vector.load %arg3[%c0_48, %c0_49] : memref<128x128xbf16, #tpu.memory_space<vmem>>, vector<32x128xbf16>
    %cst_50 = arith.constant dense<0.000000e+00> : vector<16x128xf32>
    %131 = tpu.matmul %129, %130, %cst_50 {dimension_numbers = #tpu.dot_dimension_numbers<[1], [0], [0], [1], [0, 0, 1, 1], [], []>} : vector<16x32xbf16>, vector<32x128xbf16>, vector<16x128xf32> -> vector<16x128xf32>
    %132 = arith.addf %108, %131 : vector<16x128xf32>
    %133 = vector.extract_strided_slice %3 {offsets = [16, 32], sizes = [16, 32], strides = [1, 1]} : vector<32x384xbf16> to vector<16x32xbf16>
    %134 = vector.extract_strided_slice %3 {offsets = [16, 160], sizes = [16, 32], strides = [1, 1]} : vector<32x384xbf16> to vector<16x32xbf16>
    %135 = vector.extract_strided_slice %3 {offsets = [16, 288], sizes = [16, 32], strides = [1, 1]} : vector<32x384xbf16> to vector<16x32xbf16>
    %cst_51 = arith.constant dense<0.000000e+00> : vector<16x16xf32>
    %136 = tpu.matmul %133, %134, %cst_51 {dimension_numbers = #tpu.dot_dimension_numbers<[1], [1], [0], [0], [0, 0, 1, 0], [], []>} : vector<16x32xbf16>, vector<16x32xbf16>, vector<16x16xf32> -> vector<16x16xf32>
    %cst_52 = arith.constant 0.176776692 : f32
    %137 = vector.broadcast %cst_52 : f32 to vector<16x16xf32>
    %138 = arith.mulf %136, %137 : vector<16x16xf32>
    %cst_53 = arith.constant -1.000000e+30 : f32
    %139 = vector.broadcast %cst_53 : f32 to vector<16x16xf32>
    %140 = arith.select %6, %138, %139 : vector<16x16xi1>, vector<16x16xf32>
    %cst_54 = arith.constant dense<0xFF800000> : vector<16xf32>
    %141 = vector.multi_reduction <maximumf>, %140, %cst_54 [1] : vector<16x16xf32> to vector<16xf32>
    %142 = vector.shape_cast %141 : vector<16xf32> to vector<16x1xf32>
    %143 = vector.broadcast %142 : vector<16x1xf32> to vector<16x16xf32>
    %144 = arith.subf %140, %143 : vector<16x16xf32>
    %145 = math.exp %144 : vector<16x16xf32>
    %cst_55 = arith.constant dense<0.000000e+00> : vector<16xf32>
    %146 = vector.multi_reduction <add>, %145, %cst_55 [1] : vector<16x16xf32> to vector<16xf32>
    %147 = vector.shape_cast %146 : vector<16xf32> to vector<16x1xf32>
    %148 = tpu.reciprocal %147 {approx = true} : vector<16x1xf32> -> vector<16x1xf32>
    %149 = vector.broadcast %148 : vector<16x1xf32> to vector<16x16xf32>
    %150 = arith.mulf %145, %149 : vector<16x16xf32>
    %151 = arith.truncf %150 : vector<16x16xf32> to vector<16x16xbf16>
    %cst_56 = arith.constant dense<0.000000e+00> : vector<16x32xf32>
    %152 = tpu.matmul %151, %135, %cst_56 {dimension_numbers = #tpu.dot_dimension_numbers<[1], [0], [0], [1], [0, 0, 1, 1], [], []>} : vector<16x16xbf16>, vector<16x32xbf16>, vector<16x32xf32> -> vector<16x32xf32>
    %153 = arith.truncf %152 : vector<16x32xf32> to vector<16x32xbf16>
    %c32_57 = arith.constant 32 : index
    %c0_58 = arith.constant 0 : index
    %154 = vector.load %arg3[%c32_57, %c0_58] : memref<128x128xbf16, #tpu.memory_space<vmem>>, vector<32x128xbf16>
    %cst_59 = arith.constant dense<0.000000e+00> : vector<16x128xf32>
    %155 = tpu.matmul %153, %154, %cst_59 {dimension_numbers = #tpu.dot_dimension_numbers<[1], [0], [0], [1], [0, 0, 1, 1], [], []>} : vector<16x32xbf16>, vector<32x128xbf16>, vector<16x128xf32> -> vector<16x128xf32>
    %156 = arith.addf %132, %155 : vector<16x128xf32>
    %157 = vector.extract_strided_slice %3 {offsets = [16, 64], sizes = [16, 32], strides = [1, 1]} : vector<32x384xbf16> to vector<16x32xbf16>
    %158 = vector.extract_strided_slice %3 {offsets = [16, 192], sizes = [16, 32], strides = [1, 1]} : vector<32x384xbf16> to vector<16x32xbf16>
    %159 = vector.extract_strided_slice %3 {offsets = [16, 320], sizes = [16, 32], strides = [1, 1]} : vector<32x384xbf16> to vector<16x32xbf16>
    %cst_60 = arith.constant dense<0.000000e+00> : vector<16x16xf32>
    %160 = tpu.matmul %157, %158, %cst_60 {dimension_numbers = #tpu.dot_dimension_numbers<[1], [1], [0], [0], [0, 0, 1, 0], [], []>} : vector<16x32xbf16>, vector<16x32xbf16>, vector<16x16xf32> -> vector<16x16xf32>
    %cst_61 = arith.constant 0.176776692 : f32
    %161 = vector.broadcast %cst_61 : f32 to vector<16x16xf32>
    %162 = arith.mulf %160, %161 : vector<16x16xf32>
    %cst_62 = arith.constant -1.000000e+30 : f32
    %163 = vector.broadcast %cst_62 : f32 to vector<16x16xf32>
    %164 = arith.select %6, %162, %163 : vector<16x16xi1>, vector<16x16xf32>
    %cst_63 = arith.constant dense<0xFF800000> : vector<16xf32>
    %165 = vector.multi_reduction <maximumf>, %164, %cst_63 [1] : vector<16x16xf32> to vector<16xf32>
    %166 = vector.shape_cast %165 : vector<16xf32> to vector<16x1xf32>
    %167 = vector.broadcast %166 : vector<16x1xf32> to vector<16x16xf32>
    %168 = arith.subf %164, %167 : vector<16x16xf32>
    %169 = math.exp %168 : vector<16x16xf32>
    %cst_64 = arith.constant dense<0.000000e+00> : vector<16xf32>
    %170 = vector.multi_reduction <add>, %169, %cst_64 [1] : vector<16x16xf32> to vector<16xf32>
    %171 = vector.shape_cast %170 : vector<16xf32> to vector<16x1xf32>
    %172 = tpu.reciprocal %171 {approx = true} : vector<16x1xf32> -> vector<16x1xf32>
    %173 = vector.broadcast %172 : vector<16x1xf32> to vector<16x16xf32>
    %174 = arith.mulf %169, %173 : vector<16x16xf32>
    %175 = arith.truncf %174 : vector<16x16xf32> to vector<16x16xbf16>
    %cst_65 = arith.constant dense<0.000000e+00> : vector<16x32xf32>
    %176 = tpu.matmul %175, %159, %cst_65 {dimension_numbers = #tpu.dot_dimension_numbers<[1], [0], [0], [1], [0, 0, 1, 1], [], []>} : vector<16x16xbf16>, vector<16x32xbf16>, vector<16x32xf32> -> vector<16x32xf32>
    %177 = arith.truncf %176 : vector<16x32xf32> to vector<16x32xbf16>
    %c64_66 = arith.constant 64 : index
    %c0_67 = arith.constant 0 : index
    %178 = vector.load %arg3[%c64_66, %c0_67] : memref<128x128xbf16, #tpu.memory_space<vmem>>, vector<32x128xbf16>
    %cst_68 = arith.constant dense<0.000000e+00> : vector<16x128xf32>
    %179 = tpu.matmul %177, %178, %cst_68 {dimension_numbers = #tpu.dot_dimension_numbers<[1], [0], [0], [1], [0, 0, 1, 1], [], []>} : vector<16x32xbf16>, vector<32x128xbf16>, vector<16x128xf32> -> vector<16x128xf32>
    %180 = arith.addf %156, %179 : vector<16x128xf32>
    %181 = vector.extract_strided_slice %3 {offsets = [16, 96], sizes = [16, 32], strides = [1, 1]} : vector<32x384xbf16> to vector<16x32xbf16>
    %182 = vector.extract_strided_slice %3 {offsets = [16, 224], sizes = [16, 32], strides = [1, 1]} : vector<32x384xbf16> to vector<16x32xbf16>
    %183 = vector.extract_strided_slice %3 {offsets = [16, 352], sizes = [16, 32], strides = [1, 1]} : vector<32x384xbf16> to vector<16x32xbf16>
    %cst_69 = arith.constant dense<0.000000e+00> : vector<16x16xf32>
    %184 = tpu.matmul %181, %182, %cst_69 {dimension_numbers = #tpu.dot_dimension_numbers<[1], [1], [0], [0], [0, 0, 1, 0], [], []>} : vector<16x32xbf16>, vector<16x32xbf16>, vector<16x16xf32> -> vector<16x16xf32>
    %cst_70 = arith.constant 0.176776692 : f32
    %185 = vector.broadcast %cst_70 : f32 to vector<16x16xf32>
    %186 = arith.mulf %184, %185 : vector<16x16xf32>
    %cst_71 = arith.constant -1.000000e+30 : f32
    %187 = vector.broadcast %cst_71 : f32 to vector<16x16xf32>
    %188 = arith.select %6, %186, %187 : vector<16x16xi1>, vector<16x16xf32>
    %cst_72 = arith.constant dense<0xFF800000> : vector<16xf32>
    %189 = vector.multi_reduction <maximumf>, %188, %cst_72 [1] : vector<16x16xf32> to vector<16xf32>
    %190 = vector.shape_cast %189 : vector<16xf32> to vector<16x1xf32>
    %191 = vector.broadcast %190 : vector<16x1xf32> to vector<16x16xf32>
    %192 = arith.subf %188, %191 : vector<16x16xf32>
    %193 = math.exp %192 : vector<16x16xf32>
    %cst_73 = arith.constant dense<0.000000e+00> : vector<16xf32>
    %194 = vector.multi_reduction <add>, %193, %cst_73 [1] : vector<16x16xf32> to vector<16xf32>
    %195 = vector.shape_cast %194 : vector<16xf32> to vector<16x1xf32>
    %196 = tpu.reciprocal %195 {approx = true} : vector<16x1xf32> -> vector<16x1xf32>
    %197 = vector.broadcast %196 : vector<16x1xf32> to vector<16x16xf32>
    %198 = arith.mulf %193, %197 : vector<16x16xf32>
    %199 = arith.truncf %198 : vector<16x16xf32> to vector<16x16xbf16>
    %cst_74 = arith.constant dense<0.000000e+00> : vector<16x32xf32>
    %200 = tpu.matmul %199, %183, %cst_74 {dimension_numbers = #tpu.dot_dimension_numbers<[1], [0], [0], [1], [0, 0, 1, 1], [], []>} : vector<16x16xbf16>, vector<16x32xbf16>, vector<16x32xf32> -> vector<16x32xf32>
    %201 = arith.truncf %200 : vector<16x32xf32> to vector<16x32xbf16>
    %c96_75 = arith.constant 96 : index
    %c0_76 = arith.constant 0 : index
    %202 = vector.load %arg3[%c96_75, %c0_76] : memref<128x128xbf16, #tpu.memory_space<vmem>>, vector<32x128xbf16>
    %cst_77 = arith.constant dense<0.000000e+00> : vector<16x128xf32>
    %203 = tpu.matmul %201, %202, %cst_77 {dimension_numbers = #tpu.dot_dimension_numbers<[1], [0], [0], [1], [0, 0, 1, 1], [], []>} : vector<16x32xbf16>, vector<32x128xbf16>, vector<16x128xf32> -> vector<16x128xf32>
    %204 = arith.addf %180, %203 : vector<16x128xf32>
    %205 = vector.broadcast %7 : vector<1x128xf32> to vector<16x128xf32>
    %206 = arith.addf %204, %205 : vector<16x128xf32>
    %c16 = arith.constant 16 : index
    %c0_78 = arith.constant 0 : index
    %207 = vector.load %arg5[%c16, %c0_78] : memref<32x128xf32, #tpu.memory_space<vmem>>, vector<16x128xf32>
    tpu.vector_store %arg5[%c16, %c0_78], %206 {strides = array<i32>} : memref<32x128xf32, #tpu.memory_space<vmem>>, vector<16x128xf32>,
    return
  }
  func.func @transform_0(%arg0: i32) -> (i32, i32) {
    %c0_i32 = arith.constant 0 : i32
    %c0_i32_0 = arith.constant 0 : i32
    %c0_i32_1 = arith.constant 0 : i32
    return %c0_i32, %c0_i32_0 : i32, i32
  }
  func.func @transform_1(%arg0: i32) -> (i32, i32) {
    %c0_i32 = arith.constant 0 : i32
    %c0_i32_0 = arith.constant 0 : i32
    %c0_i32_1 = arith.constant 0 : i32
    return %c0_i32, %c0_i32_0 : i32, i32
  }
  func.func @transform_2(%arg0: i32) -> (i32, i32) {
    %c0_i32 = arith.constant 0 : i32
    %c0_i32_0 = arith.constant 0 : i32
    %c0_i32_1 = arith.constant 0 : i32
    return %c0_i32, %c0_i32_0 : i32, i32
  }
  func.func @transform_3(%arg0: i32) -> (i32, i32) {
    %c0_i32 = arith.constant 0 : i32
    %c0_i32_0 = arith.constant 0 : i32
    %c0_i32_1 = arith.constant 0 : i32
    return %c0_i32, %c0_i32_0 : i32, i32
  }
  func.func @transform_4(%arg0: i32) -> (i32, i32) {
    %c0_i32 = arith.constant 0 : i32
    %c0_i32_0 = arith.constant 0 : i32
    %c0_i32_1 = arith.constant 0 : i32
    return %c0_i32, %c0_i32_0 : i32, i32
  }
}

</mosaic_0001>

<bundles_post_ra>
// kernel: tpu_custom_call.1
= control target key start
LH: loop header
LB: loop body
LE: loop exit
PB: predicated region body
PF: predicated region fallthrough
CT: control target
= control target key end

     0   :  { %9 = vsyncpa [#allocation3], 0  ;;  %s1855_s0 = inlined_call_operand.hbm [shape: bf16[32,128], index: 0, kind: input, shape index: {}]   ;;  %s1856_s1 = inlined_call_operand.hbm [shape: bf16[128,384], index: 1, kind: input, shape index: {}]   ;;  %s1857_s2 = inlined_call_operand.hbm [shape: bf16[128,128], index: 2, kind: input, shape index: {}]   ;;  %s1858_s3 = inlined_call_operand.vmem [shape: f32[1,128], index: 3, kind: input, shape index: {}]   ;;  %s1859_s4 = inlined_call_operand.hbm [shape: f32[32,128], index: 4, kind: output, shape index: {}]  }
   0x1   :  { %10 = vsyncpa [#allocation6], 0  ;;  %s29_s17 = sshll.u32 %s1856_s1, 4  ;;  %s30_s17 = int_to_ptr.hbm [resolvable:$true] %s29_s17 }
   0x2   :  { %11 = vsyncpa [#allocation4], 0  ;;  %s1623_s18 = smov [#allocation5]   ;;  %s16_s22 = sshll.u32 %s1855_s0, 4  ;;  %s17_s22 = int_to_ptr.hbm [resolvable:$true] %s16_s22 }
   0x3   :  { %s31_s19 = sshll.u32 %s1623_s18, 4  ;;  %s1624_s23 = smov 192   ;;  %s32_s19 = int_to_ptr.vmem [resolvable:$true] %s31_s19 }
   0x4   :  { %s1625_s24 = smov 12   ;;  %s1626_s25 = smov [#allocation2]  }
   0x5   :  { %37 = dma.hbm_to_vmem [thread:$0]  %s30_s17, 3072, %s32_s19, [#allocation6], %s1624_s23, %s1624_s23, %s1625_s24  }
   0x6   :  { %s18_s26 = sshll.u32 %s1626_s25, 4  ;;  %s1627_s27 = smov 64   ;;  %s19_s26 = int_to_ptr.vmem [resolvable:$true] %s18_s26 }
   0x7   :  { %s1628_s28 = smov 4   ;;  %s42_s30 = sshll.u32 %s1857_s2, 4  ;;  %s43_s30 = int_to_ptr.hbm [resolvable:$true] %s42_s30 }
   0x8   :  { %24 = dma.hbm_to_vmem [thread:$0]  %s17_s22, 256, %s19_s26, [#allocation3], %s1627_s27, %s1627_s27, %s1628_s28  }
   0x9   :  { %s1629_s5 = smov [#allocation7]  }
   0xa   :  { %s44_s6 = sshll.u32 %s1629_s5, 4  ;;  %s45_s6 = int_to_ptr.vmem [resolvable:$true] %s44_s6 }
   0xb   :  { %50 = dma.hbm_to_vmem [thread:$0]  %s43_s30, 1024, %s45_s6, [#allocation6], %s1627_s27, %s1627_s27, %s1628_s28  }
   0xc   :  { %1617 = dma.done.wait [#allocation3], 256  }
   0xd   :  { %1618 = vsyncadd [#allocation3], 4294967040 }
   0xe   :  { %1619 = dma.done.wait [#allocation6], 4096  }
   0xf   :  { %1620 = vsyncadd [#allocation6], 4294963200  ;;  %v1304_v0 = vld [vmem:[#allocation5 + $0xa8] sm:$0xf]  ;;  %v1426_v1 = vld [vmem:[#allocation5 + $0xb0] sm:$0xf0] }
  0x10   :  { %v1425_v2 = vld [vmem:[#allocation5 + $0xac] sm:$0xf]  ;;  %v1305_v3 = vor.u32 %v1426_v1, %v1304_v0  ;;  %v1306_v4 = vld [vmem:[#allocation5 + $0xb4] sm:$0xf0]  ;;  %v1292_v5 = vld [vmem:[#allocation5 + $0x90] sm:$0xf] }
  0x11   :  { %v1423_v6 = vld [vmem:[#allocation5 + $0x98] sm:$0xf0]  ;;  %v1309_v7 = vor.u32 %v1425_v2, %v1306_v4  ;;  %v1422_v8 = vld [vmem:[#allocation5 + $0x94] sm:$0xf]  ;;  %v1294_v9 = vld [vmem:[#allocation5 + $0x9c] sm:$0xf0] }
  0x12   :  { %242 = vmatpush.bf16.msra.mxu0 %v1305_v3  ;;  %v1293_v10 = vor.u32 %v1423_v6, %v1292_v5  ;;  %v1297_v11 = vor.u32 %v1422_v8, %v1294_v9  ;;  %v1280_v12 = vld [vmem:[#allocation5 + $0x78] sm:$0xf]  ;;  %v1420_v13 = vld [vmem:[#allocation5 + $0x80] sm:$0xf0]  ;;  %v1419_v14 = vld [vmem:[#allocation5 + $0x7c] sm:$0xf] }
  0x13   :  { %261 = vmatpush.bf16.msra.mxu1 %v1309_v7  ;;  %v1282_v15 = vld [vmem:[#allocation5 + $0x84] sm:$0xf0]  ;;  %v1281_v16 = vor.u32 %v1420_v13, %v1280_v12  ;;  %v1268_v18 = vld [vmem:[#allocation5 + $0x60] sm:$0xf]  ;;  %v1417_v19 = vld [vmem:[#allocation5 + $0x68] sm:$0xf0] }
  0x14   :  { %v1285_v17 = vor.u32 %v1419_v14, %v1282_v15  ;;  %v1416_v20 = vld [vmem:[#allocation5 + $0x64] sm:$0xf]  ;;  %v1270_v21 = vld [vmem:[#allocation5 + $0x6c] sm:$0xf0]  ;;  %v1269_v22 = vor.u32 %v1417_v19, %v1268_v18  ;;  %v1427_v24 = vld [vmem:[#allocation5 + $0xb8] sm:$0xf0] }
  0x15   :  { %v1312_v23 = vld [vmem:[#allocation5 + $0xb0] sm:$0xf]  ;;  %v1300_v25 = vld [vmem:[#allocation5 + $0x98] sm:$0xf]  ;;  %v1273_v26 = vor.u32 %v1416_v20, %v1270_v21  ;;  %v1256_v27 = vld [vmem:[#allocation5 + $0x48] sm:$0xf] }
  0x16   :  { %243 = vmatpush.bf16.msra.mxu0 %v1293_v10  ;;  %v1414_v28 = vld [vmem:[#allocation5 + $0x50] sm:$0xf0]  ;;  %v1313_v29 = vor.u32 %v1427_v24, %v1312_v23  ;;  %v1424_v30 = vld [vmem:[#allocation5 + $0xa0] sm:$0xf0]  ;;  %v1413_v31 = vld [vmem:[#allocation5 + $0x4c] sm:$0xf] }
  0x17   :  { %262 = vmatpush.bf16.msra.mxu1 %v1297_v11  ;;  %v1258_v32 = vld [vmem:[#allocation5 + $0x54] sm:$0xf0]  ;;  %v1301_v33 = vor.u32 %v1424_v30, %v1300_v25  ;;  %v1257_v34 = vor.u32 %v1414_v28, %v1256_v27  ;;  %v1288_v35 = vld [vmem:[#allocation5 + $0x80] sm:$0xf]  ;;  %v1421_v36 = vld [vmem:[#allocation5 + $0x88] sm:$0xf0] }
  0x18   :  { %280 = vmatpush.bf16.msra.mxu2 %v1313_v29  ;;  %v1261_v37 = vor.u32 %v1413_v31, %v1258_v32  ;;  %v1244_v38 = vld [vmem:[#allocation5 + $0x30] sm:$0xf]  ;;  %v1411_v39 = vld [vmem:[#allocation5 + $0x38] sm:$0xf0]  ;;  %v1410_v40 = vld [vmem:[#allocation5 + $0x34] sm:$0xf]  ;;  %v1289_v42 = vor.u32 %v1421_v36, %v1288_v35  ;;  %v307_v31 = vlaneseq }
  0x19   :  { %v1246_v41 = vld [vmem:[#allocation5 + $0x3c] sm:$0xf0]  ;;  %v1245_v43 = vor.u32 %v1411_v39, %v1244_v38  ;;  %v1276_v44 = vld [vmem:[#allocation5 + $0x68] sm:$0xf]  ;;  %v1418_v45 = vld [vmem:[#allocation5 + $0x70] sm:$0xf0] }
  0x1a   :  { %244 = vmatpush.bf16.msra.mxu0 %v1281_v16  ;;  %v1249_v46 = vor.u32 %v1410_v40, %v1246_v41  ;;  %v1232_v47 = vld [vmem:[#allocation5 + $0x18] sm:$0xf]  ;;  %v1408_v48 = vld [vmem:[#allocation5 + $0x20] sm:$0xf0]  ;;  %v1407_v49 = vld [vmem:[#allocation5 + $0x1c] sm:$0xf]  ;;  %v1277_v51 = vor.u32 %v1418_v45, %v1276_v44 }
  0x1b   :  { %263 = vmatpush.bf16.msra.mxu1 %v1285_v17  ;;  %v1234_v50 = vld [vmem:[#allocation5 + $0x24] sm:$0xf0]  ;;  %v1233_v52 = vor.u32 %v1408_v48, %v1232_v47  ;;  %v1264_v53 = vld [vmem:[#allocation5 + $0x50] sm:$0xf]  ;;  %v1415_v54 = vld [vmem:[#allocation5 + $0x58] sm:$0xf0] }
  0x1c   :  { %281 = vmatpush.bf16.msra.mxu2 %v1301_v33  ;;  %v1237_v55 = vor.u32 %v1407_v49, %v1234_v50  ;;  %v1220_v56 = vld [vmem:[#allocation5] sm:$0xf]  ;;  %v1405_v57 = vld [vmem:[#allocation5 + $0x8] sm:$0xf0]  ;;  %v1404_v58 = vld [vmem:[#allocation5 + $0x4] sm:$0xf]  ;;  %v1265_v60 = vor.u32 %v1415_v54, %v1264_v53 }
  0x1d   :  { %v1222_v59 = vld [vmem:[#allocation5 + $0xc] sm:$0xf0]  ;;  %v1221_v61 = vor.u32 %v1405_v57, %v1220_v56  ;;  %v1252_v62 = vld [vmem:[#allocation5 + $0x38] sm:$0xf]  ;;  %v1412_v63 = vld [vmem:[#allocation5 + $0x40] sm:$0xf0] }
  0x1e   :  { %245 = vmatpush.bf16.msra.mxu0 %v1269_v22  ;;  %v1225_v0 = vor.u32 %v1404_v58, %v1222_v59  ;;  %v1402_v1 = vld [vmem:[#allocation2] sm:$0xff]  ;;  %v1253_v2 = vor.u32 %v1412_v63, %v1252_v62  ;;  %v1240_v3 = vld [vmem:[#allocation5 + $0x20] sm:$0xf]  ;;  %v1409_v4 = vld [vmem:[#allocation5 + $0x28] sm:$0xf0]  ;;  %vm323_vm0 = vcmask 261120  }
  0x1f   :  { %264 = vmatpush.bf16.msra.mxu1 %v1273_v26  ;;  %v1241_v5 = vor.u32 %v1409_v4, %v1240_v3  ;;  %v1228_v6 = vld [vmem:[#allocation5 + $0x8] sm:$0xf]  ;;  %v1406_v7 = vld [vmem:[#allocation5 + $0x10] sm:$0xf0]  ;;  %s1630_s0 = smov 96   ;;  %v308_v32 = vshrl.u32 %v307_v31, 7 }
  0x20   :  { %282 = vmatpush.bf16.msra.mxu2 %v1289_v42  ;;  %v1229_v8 = vor.u32 %v1406_v7, %v1228_v6  ;;  %v311_v33 = vand.u32 127, %v307_v31  ;;  %vm348_vm2 = vcmask 130048   ;;  %v1403_v57 = vld [vmem:[#allocation2 + $0x8] sm:$0xff]  ;;  %s1631_s2 = smov 32   ;;  %v1826_v35 = vld [vmem:[%s1858_s3] ss:$0 sm:$0xff] }
  0x21   :  { %v309_v39 = vadd.s32 8, %v308_v32  ;;  %s1632_s3 = smov [#allocation8]   ;;  %s1196_s12 = sshll.u32 %s1859_s4, 4  ;;  %s1197_s12 = int_to_ptr.hbm [resolvable:$true] %s1196_s12 }
  0x22   :  { %246 = vmatpush.bf16.msra.mxu0 %v1257_v34  ;;  %vm1689_vm1 = vcmp.le.s32.totalorder %v311_v33, %v308_v32  ;;  %s1194_s9 = sshll.u32 %s1632_s3, 4  ;;  %s1633_s13 = smov 128   ;;  %s1195_s9 = int_to_ptr.vmem [resolvable:$true] %s1194_s9 }
  0x23   :  { %265 = vmatpush.bf16.msra.mxu1 %v1261_v37  ;;  %vm1696_vm3 = vcmp.le.s32.totalorder %v311_v33, %v309_v39  ;;  %s1634_s14 = smov 8  }
  0x24   :  { %283 = vmatpush.bf16.msra.mxu2 %v1277_v51 }
  0x26   :  { %247 = vmatpush.bf16.msra.mxu0 %v1245_v43 }
  0x27   :  { %266 = vmatpush.bf16.msra.mxu1 %v1249_v46 }
  0x28   :  { %284 = vmatpush.bf16.msra.mxu2 %v1265_v60 }
  0x2a   :  { %248 = vmatpush.bf16.msra.mxu0 %v1233_v52 }
  0x2b   :  { %267 = vmatpush.bf16.msra.mxu1 %v1237_v55 }
  0x2c   :  { %285 = vmatpush.bf16.msra.mxu2 %v1253_v2 }
  0x2e   :  { %249 = vmatpush.bf16.msra.mxu0 %v1221_v61 }
  0x2f   :  { %268 = vmatpush.bf16.msra.mxu1 %v1225_v0 }
  0x30   :  { %286 = vmatpush.bf16.msra.mxu2 %v1241_v5 }
  0x31   :  { %250 = vmatmul.bf16.vlgmr.msra.gmra.mxu0 %v1402_v1 }
  0x32   :  { %269 = vmatmul.bf16.vlgmr.msra.gmra.mxu1 %v1402_v1 }
  0x34   :  { %287 = vmatpush.bf16.msra.mxu2 %v1229_v8 }
  0x37   :  { %288 = vmatmul.bf16.vlgmr.msra.gmra.mxu2 %v1402_v1 }
  0x41   :  { %255 = vmatmul.bf16.gmra.mxu0 %v1403_v57 }
  0x42   :  { %274 = vmatmul.bf16.gmra.mxu1 %v1403_v57 }
  0x47   :  { %293 = vmatmul.bf16.gmra.mxu2 %v1403_v57 }
  0xae   :  { %v251_v9 = vpop.f32.mrf.mxu0 }
  0xaf   :  { %v270_v10 = vpop.f32.mrf.mxu1 }
  0xb0   :  { %v299_v11 = vpack.c.bf16 %v270_v10, %v251_v9  ;;  %v1429_v9 = vld [vmem:[#allocation7 + $0x8] sm:$0xff] }
  0xb1   :  { %526 = vmatpush.bf16.msrb.mxu1 %v1429_v9 }
  0xb2   :  { %v320_v15 = vunpack.c.h.b16 %v299_v11  ;;  %v317_v21 = vunpack.c.l.b16 %v299_v11  ;;  %v1428_v11 = vld [vmem:[#allocation7] sm:$0xff] }
  0xb5   :  { %527 = vmatpush.bf16.msrb.mxu1 %v1428_v11  ;;  %v1430_v11 = vld [vmem:[#allocation7 + $0x10] sm:$0xff] }
  0xb6   :  { %v253_v12 = vpop.f32.mrf.mxu0 }
  0xb7   :  { %v272_v13 = vpop.f32.mrf.mxu1 }
  0xb8   :  { %v301_v14 = vpack.c.bf16 %v272_v13, %v253_v12 }
  0xba   :  { %v321_v16 = vunpack.c.h.b16 %v301_v14  ;;  %v289_v19 = vpop.f32.mrf.mxu2  ;;  %v318_v20 = vunpack.c.l.b16 %v301_v14 }
  0xbb   :  { %v300_v23 = vpack.c.bf16 %v289_v19, %v289_v19 }
  0xbc   :  { %v1673_v17 = vpack.c.b16 %v321_v16, %v320_v15  ;;  %v1679_v22 = vpack.c.b16 %v318_v20, %v317_v21 }
  0xbd   :  { %v374_v25 = vunpack.c.l.b16 %v300_v23 }
  0xbe   :  { %402 = vrot.lane.b32.xlu2 %v1673_v17, %s1630_s0  ;;  %v328_v18 = vsel %vm323_vm0, %v1673_v17, 0 }
  0xbf   :  { %337 = vmatpush.bf16.xpose.msra.mxu3 %v328_v18 }
  0xc2   :  { %v291_v24 = vpop.f32.mrf.mxu2 }
  0xc3   :  { %v302_v26 = vpack.c.bf16 %v291_v24, %v291_v24 }
  0xc5   :  { %v375_v27 = vunpack.c.l.b16 %v302_v26 }
  0xc6   :  { %400 = vrot.lane.b32.xlu2 %v1679_v22, %s1630_s0  ;;  %1314 = vmatmul.msk.bf16.vlgmr.msra.gmra.mxu3 %vm323_vm0, %v1679_v22 }
  0xc7   :  { %v1685_v28 = vpack.c.b16 %v375_v27, %v374_v25 }
  0xc9   :  { %388 = vmatpush.bf16.msrb.mxu3 %v1685_v28 }
  0xca   :  { %v294_v3 = vpop.f32.mrf.mxu2 }
  0xcb   :  { %v304_v4 = vpack.c.bf16 %v294_v3, %v294_v3 }
  0xcd   :  { %v812_v6 = vunpack.c.l.b16 %v304_v4 }
  0xd2   :  { %v296_v5 = vpop.f32.mrf.mxu2 }
  0xd3   :  { %v306_v7 = vpack.c.bf16 %v296_v5, %v296_v5 }
  0xd5   :  { %v813_v8 = vunpack.c.l.b16 %v306_v7 }
  0xd7   :  { %v1713_v10 = vpack.c.b16 %v813_v8, %v812_v6 }
 0x118   :  { %v403_v29 = vpop.permute.xlu2 %402 }
 0x119   :  { %v408_v30 = vsel %vm323_vm0, %v403_v29, 0 }
 0x11a   :  { %417 = vmatpush.bf16.xpose.msra.mxu3 %v408_v30 }
 0x120   :  { %v401_v2 = vpop.permute.xlu2 %400 }
 0x149   :  { %v339_v34 = vpop.f32.mrf.mxu3 }
 0x14a   :  { %v344_v36 = vmul.f32 0.17677669, %v339_v34 }
 0x14c   :  { %v346_v37 = vsel %vm1689_vm1, %v344_v36, -1e+30 }
 0x14d   :  { %v349_v38 = vsel %vm348_vm2, %v346_v37, -inf }
 0x14e   :  { %350 = vmax.xlane.f32.xlu0 %v349_v38 }
 0x151   :  { %v341_v40 = vpop.f32.mrf.mxu3 }
 0x152   :  { %v345_v42 = vmul.f32 0.17677669, %v341_v40 }
 0x154   :  { %v347_v43 = vsel %vm1696_vm3, %v345_v42, -1e+30 }
 0x155   :  { %v352_v44 = vsel %vm348_vm2, %v347_v43, -inf }
 0x156   :  { %353 = vmax.xlane.f32.xlu0 %v352_v44 }
 0x16a   :  { %536 = vrot.lane.b32.xlu0 %v1673_v17, %s1627_s27 }
 0x1c1   :  { %v351_v45 = vpop.xlane.xlu0 %350 }
 0x1c2   :  { %v355_v46 = vsub.f32 %v346_v37, %v351_v45 }
 0x1c4   :  { %v357_v47 = vmul.f32 1.442695, %v355_v46 }
 0x1c6   :  { %1457 = vpow2.f32 %v357_v47 }
 0x1c9   :  { %v354_v48 = vpop.xlane.xlu0 %353 }
 0x1ca   :  { %v356_v49 = vsub.f32 %v347_v43, %v354_v48 }
 0x1cc   :  { %v1458_v50 = vpop.eup %1457  ;;  %v359_v51 = vmul.f32 1.442695, %v356_v49 }
 0x1cd   :  { %v361_v52 = vsel %vm348_vm2, %v1458_v50, 0.0 }
 0x1ce   :  { %1459 = vpow2.f32 %v359_v51  ;;  %362 = vadd.xlane.f32.xlu1 %v361_v52 }
 0x1d4   :  { %v1460_v53 = vpop.eup %1459 }
 0x1d5   :  { %v364_v54 = vsel %vm348_vm2, %v1460_v53, 0.0 }
 0x1d6   :  { %365 = vadd.xlane.f32.xlu1 %v364_v54 }
 0x1dc   :  { %v537_v55 = vpop.permute.xlu0 %536 }
 0x1dd   :  { %v542_v56 = vsel %vm323_vm0, %v537_v55, 0 }
 0x1de   :  { %551 = vmatpush.bf16.xpose.msrb.mxu2 %v542_v56 }
 0x1ef   :  { %534 = vrot.lane.b32.xlu1 %v1679_v22, %s1627_s27 }
 0x241   :  { %v363_v58 = vpop.xlane.xlu1 %362 }
 0x242   :  { %1461 = vrcp.f32 %v363_v58  ;;  %v1431_v58 = vld [vmem:[#allocation7 + $0x18] sm:$0xff] }
 0x243   :  { %497 = vmatpush.bf16.msrb.mxu0 %v1431_v58 }
 0x247   :  { %498 = vmatpush.bf16.msrb.mxu0 %v1430_v11 }
 0x248   :  { %v1462_v60 = vpop.eup %1461 }
 0x249   :  { %v366_v59 = vpop.xlane.xlu1 %365  ;;  %v369_v62 = vmul.f32 %v1462_v60, %v1458_v50 }
 0x24a   :  { %1463 = vrcp.f32 %v366_v59 }
 0x250   :  { %v1464_v61 = vpop.eup %1463 }
 0x251   :  { %v370_v63 = vmul.f32 %v1464_v61, %v1460_v53 }
 0x253   :  { %v371_v0 = vpack.c.bf16 %v370_v63, %v369_v62 }
 0x255   :  { %1315 = vmatmul.msk.bf16.vlgmr.msrb.gmra.mxu3 %vm348_vm2, %v371_v0 }
 0x261   :  { %v535_v1 = vpop.permute.xlu1 %534 }
 0x262   :  { %1336 = vmatmul.msk.bf16.vlgmr.msrb.gmra.mxu2 %vm323_vm0, %v535_v1 }
 0x265   :  { %1316 = vmatmul.msk.bf16.vlgmr.msra.gmra.mxu3 %vm323_vm0, %v401_v2 }
 0x2d8   :  { %v390_v12 = vpop.f32.mrf.mxu3 }
 0x2e0   :  { %v392_v13 = vpop.f32.mrf.mxu3 }
 0x2e1   :  { %v395_v14 = vpack.c.bf16 %v392_v13, %v390_v12  ;;  %v256_v12 = vpop.f32.mrf.mxu0  ;;  %v275_v13 = vpop.f32.mrf.mxu1 }
 0x2e3   :  { %1335 = vmatmul.msk.bf16.vlgmr.msrb.gmra.mxu1 %vm323_vm0, %v395_v14  ;;  %v1433_v14 = vld [vmem:[#allocation7 + $0x28] sm:$0xff] }
 0x2e4   :  { %631 = vmatpush.bf16.msra.mxu0 %v1433_v14 }
 0x2e5   :  { %v553_v15 = vpop.f32.mrf.mxu2 }
 0x2e6   :  { %v558_v16 = vmul.f32 0.17677669, %v553_v15  ;;  %v1432_v15 = vld [vmem:[#allocation7 + $0x20] sm:$0xff] }
 0x2e8   :  { %v419_v18 = vpop.f32.mrf.mxu3  ;;  %v560_v19 = vsel %vm1689_vm1, %v558_v16, -1e+30  ;;  %632 = vmatpush.bf16.msra.mxu0 %v1432_v15 }
 0x2e9   :  { %v424_v20 = vmul.f32 0.17677669, %v419_v18  ;;  %v562_v21 = vsel %vm348_vm2, %v560_v19, -inf  ;;  %v258_v16 = vpop.f32.mrf.mxu0  ;;  %v277_v18 = vpop.f32.mrf.mxu1 }
 0x2ea   :  { %563 = vmax.xlane.f32.xlu1 %v562_v21 }
 0x2eb   :  { %v426_v23 = vsel %vm1689_vm1, %v424_v20, -1e+30  ;;  %v305_v20 = vpack.c.bf16 %v277_v18, %v258_v16  ;;  %v1437_v16 = vld [vmem:[#allocation7 + $0x8] sm:$0xff] }
 0x2ec   :  { %v428_v24 = vsel %vm348_vm2, %v426_v23, -inf }
 0x2ed   :  { %429 = vmax.xlane.f32.xlu2 %v428_v24  ;;  %v555_v25 = vpop.f32.mrf.mxu2  ;;  %v761_v24 = vunpack.c.h.b16 %v305_v20 }
 0x2ee   :  { %v559_v26 = vmul.f32 0.17677669, %v555_v25 }
 0x2f0   :  { %v421_v27 = vpop.f32.mrf.mxu3  ;;  %v561_v30 = vsel %vm1696_vm3, %v559_v26, -1e+30 }
 0x2f1   :  { %v425_v29 = vmul.f32 0.17677669, %v421_v27  ;;  %v565_v33 = vsel %vm348_vm2, %v561_v30, -inf }
 0x2f3   :  { %v427_v31 = vsel %vm1696_vm3, %v425_v29, -1e+30 }
 0x2f4   :  { %v431_v32 = vsel %vm348_vm2, %v427_v31, -inf }
 0x2f5   :  { %432 = vmax.xlane.f32.xlu0 %v431_v32  ;;  %566 = vmax.xlane.f32.xlu2 %v565_v33 }
 0x309   :  { %451 = vrot.lane.b32.xlu0 %v1685_v28, %s1630_s0 }
 0x311   :  { %641 = vrot.lane.b32.xlu0 %v1679_v22, %s1631_s2 }
 0x35d   :  { %v564_v34 = vpop.xlane.xlu1 %563 }
 0x35e   :  { %v568_v36 = vsub.f32 %v560_v19, %v564_v34  ;;  %v303_v19 = vpack.c.bf16 %v275_v13, %v256_v12  ;;  %v758_v34 = vunpack.c.l.b16 %v305_v20 }
 0x360   :  { %v570_v37 = vmul.f32 1.442695, %v568_v36  ;;  %v430_v38 = vpop.xlane.xlu2 %429  ;;  %v757_v33 = vunpack.c.l.b16 %v303_v19 }
 0x361   :  { %v434_v39 = vsub.f32 %v426_v23, %v430_v38  ;;  %v760_v23 = vunpack.c.h.b16 %v303_v19 }
 0x362   :  { %1465 = vpow2.f32 %v570_v37  ;;  %v1751_v36 = vpack.c.b16 %v758_v34, %v757_v33 }
 0x363   :  { %v436_v40 = vmul.f32 1.442695, %v434_v39  ;;  %v1745_v25 = vpack.c.b16 %v761_v24, %v760_v23  ;;  %v529_v39 = vpop.f32.mrf.mxu1  ;;  %v1436_v23 = vld [vmem:[#allocation7] sm:$0xff] }
 0x365   :  { %1467 = vpow2.f32 %v436_v40  ;;  %v767_v29 = vsel %vm323_vm0, %v1745_v25, 0 }
 0x368   :  { %v1466_v42 = vpop.eup %1465  ;;  %v567_v43 = vpop.xlane.xlu2 %566 }
 0x369   :  { %v569_v44 = vsub.f32 %v561_v30, %v567_v43  ;;  %v433_v45 = vpop.xlane.xlu0 %432  ;;  %v574_v46 = vsel %vm348_vm2, %v1466_v42, 0.0 }
 0x36a   :  { %v435_v47 = vsub.f32 %v427_v31, %v433_v45  ;;  %575 = vadd.xlane.f32.xlu2 %v574_v46 }
 0x36b   :  { %v572_v48 = vmul.f32 1.442695, %v569_v44  ;;  %v1468_v22 = vpop.eup %1467  ;;  %v531_v44 = vpop.f32.mrf.mxu1 }
 0x36c   :  { %v438_v49 = vmul.f32 1.442695, %v435_v47  ;;  %v440_v50 = vsel %vm348_vm2, %v1468_v22, 0.0 }
 0x36d   :  { %1469 = vpow2.f32 %v572_v48 }
 0x36e   :  { %1471 = vpow2.f32 %v438_v49 }
 0x372   :  { %441 = vadd.xlane.f32.xlu2 %v440_v50 }
 0x373   :  { %v1470_v51 = vpop.eup %1469 }
 0x374   :  { %v577_v52 = vsel %vm348_vm2, %v1470_v51, 0.0  ;;  %v1472_v53 = vpop.eup %1471 }
 0x375   :  { %578 = vadd.xlane.f32.xlu1 %v577_v52  ;;  %v443_v54 = vsel %vm348_vm2, %v1472_v53, 0.0 }
 0x37a   :  { %444 = vadd.xlane.f32.xlu2 %v443_v54 }
 0x37b   :  { %v452_v55 = vpop.permute.xlu0 %451 }
 0x37c   :  { %464 = vmatpush.bf16.msrb.mxu3 %v452_v55 }
 0x383   :  { %v642_v9 = vpop.permute.xlu0 %641 }
 0x38e   :  { %643 = vrot.lane.b32.xlu1 %v1673_v17, %s1631_s2 }
 0x392   :  { %585 = vrot.lane.b32.xlu2 %v1685_v28, %s1627_s27 }
 0x3dd   :  { %v576_v56 = vpop.xlane.xlu2 %575 }
 0x3e5   :  { %v442_v57 = vpop.xlane.xlu2 %441 }
 0x3e6   :  { %1473 = vrcp.f32 %v442_v57 }
 0x3e8   :  { %v579_v1 = vpop.xlane.xlu1 %578 }
 0x3ec   :  { %v1474_v60 = vpop.eup %1473 }
 0x3ed   :  { %v445_v59 = vpop.xlane.xlu2 %444  ;;  %v448_v62 = vmul.f32 %v1474_v60, %v1468_v22 }
 0x3ee   :  { %1475 = vrcp.f32 %v445_v59 }
 0x3ef   :  { %1477 = vrcp.f32 %v579_v1 }
 0x3f0   :  { %1479 = vrcp.f32 %v576_v56 }
 0x3f4   :  { %v1476_v61 = vpop.eup %1475 }
 0x3f5   :  { %v449_v63 = vmul.f32 %v1476_v61, %v1472_v53  ;;  %v586_v0 = vpop.permute.xlu2 %585  ;;  %v1478_v17 = vpop.eup %1477 }
 0x3f6   :  { %598 = vmatpush.bf16.msra.mxu3 %v586_v0  ;;  %v1480_v5 = vpop.eup %1479  ;;  %v583_v6 = vmul.f32 %v1478_v17, %v1470_v51 }
 0x3f7   :  { %v450_v2 = vpack.c.bf16 %v449_v63, %v448_v62  ;;  %v582_v7 = vmul.f32 %v1480_v5, %v1466_v42 }
 0x3f9   :  { %1317 = vmatmul.msk.bf16.vlgmr.msrb.gmra.mxu3 %vm348_vm2, %v450_v2  ;;  %v584_v8 = vpack.c.bf16 %v583_v6, %v582_v7 }
 0x400   :  { %v644_v3 = vpop.permute.xlu1 %643 }
 0x401   :  { %v649_v4 = vsel %vm323_vm0, %v644_v3, 0 }
 0x402   :  { %658 = vmatpush.bf16.xpose.msra.mxu1 %v649_v4 }
 0x409   :  { %1337 = vmatmul.msk.bf16.vlgmr.msra.gmra.mxu3 %vm348_vm2, %v584_v8  ;;  %1347 = vmatmul.msk.bf16.vlgmr.msra.gmra.mxu1 %vm323_vm0, %v642_v9 }
 0x40a   :  { %826 = vmatpush.bf16.msrb.mxu1 %v1713_v10 }
 0x40e   :  { %964 = vmatpush.bf16.msra.mxu1 %v1437_v16 }
 0x412   :  { %965 = vmatpush.bf16.msra.mxu1 %v1436_v23 }
 0x47c   :  { %v466_v21 = vpop.f32.mrf.mxu3 }
 0x484   :  { %v468_v26 = vpop.f32.mrf.mxu3 }
 0x485   :  { %v471_v27 = vpack.c.bf16 %v468_v26, %v466_v21 }
 0x486   :  { %v660_v53 = vpop.f32.mrf.mxu1 }
 0x487   :  { %1326 = vmatmul.msk.bf16.vlgmr.msrb.gmra.mxu0 %vm323_vm0, %v471_v27  ;;  %v665_v56 = vmul.f32 0.17677669, %v660_v53  ;;  %v1435_v53 = vld [vmem:[#allocation7 + $0x38] sm:$0xff] }
 0x488   :  { %776 = vmatpush.bf16.xpose.msrb.mxu0 %v767_v29  ;;  %738 = vmatpush.bf16.msrb.mxu3 %v1435_v53 }
 0x489   :  { %v667_v57 = vsel %vm1689_vm1, %v665_v56, -1e+30 }
 0x48a   :  { %v669_v58 = vsel %vm348_vm2, %v667_v57, -inf }
 0x48c   :  { %v600_v30 = vpop.f32.mrf.mxu3 }
 0x48e   :  { %v662_v4 = vpop.f32.mrf.mxu1 }
 0x48f   :  { %v666_v8 = vmul.f32 0.17677669, %v662_v4 }
 0x491   :  { %v668_v9 = vsel %vm1696_vm3, %v666_v8, -1e+30 }
 0x492   :  { %v672_v12 = vsel %vm348_vm2, %v668_v9, -inf }
 0x494   :  { %v602_v31 = vpop.f32.mrf.mxu3 }
 0x495   :  { %v605_v32 = vpack.c.bf16 %v602_v31, %v600_v30 }
 0x497   :  { %1346 = vmatmul.msk.bf16.vlgmr.msra.gmra.mxu0 %vm323_vm0, %v605_v32 }
 0x4a7   :  { %1358 = vmatmul.msk.bf16.vlgmr.msrb.gmra.mxu0 %vm323_vm0, %v1751_v36 }
 0x504   :  { %v500_v37 = vpop.f32.mrf.mxu0 }
 0x505   :  { %v530_v40 = vadd.f32 %v529_v39, %v500_v37 }
 0x50c   :  { %v502_v38 = vpop.f32.mrf.mxu0 }
 0x50d   :  { %v532_v45 = vadd.f32 %v531_v44, %v502_v38 }
 0x514   :  { %v634_v42 = vpop.f32.mrf.mxu0 }
 0x515   :  { %v1755_v43 = vadd.f32 %v634_v42, %v530_v40 }
 0x51c   :  { %v636_v46 = vpop.f32.mrf.mxu0 }
 0x51d   :  { %v1757_v47 = vadd.f32 %v636_v46, %v532_v45 }
 0x524   :  { %v778_v48 = vpop.f32.mrf.mxu0 }
 0x525   :  { %v783_v49 = vmul.f32 0.17677669, %v778_v48 }
 0x527   :  { %v785_v22 = vsel %vm1689_vm1, %v783_v49, -1e+30 }
 0x528   :  { %v787_v50 = vsel %vm348_vm2, %v785_v22, -inf }
 0x529   :  { %788 = vmax.xlane.f32.xlu0 %v787_v50 }
 0x52c   :  { %v780_v51 = vpop.f32.mrf.mxu0 }
 0x52d   :  { %v784_v52 = vmul.f32 0.17677669, %v780_v51 }
 0x52f   :  { %v786_v54 = vsel %vm1696_vm3, %v784_v52, -1e+30 }
 0x530   :  { %v790_v55 = vsel %vm348_vm2, %v786_v54, -inf }
 0x531   :  { %791 = vmax.xlane.f32.xlu2 %v790_v55 }
 0x539   :  { %670 = vmax.xlane.f32.xlu2 %v669_v58 }
 0x59c   :  { %v789_v59 = vpop.xlane.xlu0 %788 }
 0x59d   :  { %v793_v60 = vsub.f32 %v785_v22, %v789_v59 }
 0x59f   :  { %v795_v61 = vmul.f32 1.442695, %v793_v60 }
 0x5a1   :  { %1481 = vpow2.f32 %v795_v61 }
 0x5a4   :  { %v792_v62 = vpop.xlane.xlu2 %791 }
 0x5a5   :  { %v794_v63 = vsub.f32 %v786_v54, %v792_v62  ;;  %v1434_v54 = vld [vmem:[#allocation7 + $0x30] sm:$0xff] }
 0x5a6   :  { %739 = vmatpush.bf16.msrb.mxu3 %v1434_v54 }
 0x5a7   :  { %v1482_v0 = vpop.eup %1481  ;;  %v797_v1 = vmul.f32 1.442695, %v794_v63 }
 0x5a8   :  { %v799_v2 = vsel %vm348_vm2, %v1482_v0, 0.0 }
 0x5a9   :  { %1483 = vpow2.f32 %v797_v1  ;;  %800 = vadd.xlane.f32.xlu1 %v799_v2 }
 0x5ac   :  { %v671_v17 = vpop.xlane.xlu2 %670 }
 0x5ad   :  { %v675_v3 = vsub.f32 %v667_v57, %v671_v17 }
 0x5af   :  { %v1484_v5 = vpop.eup %1483  ;;  %v677_v6 = vmul.f32 1.442695, %v675_v3 }
 0x5b0   :  { %v802_v7 = vsel %vm348_vm2, %v1484_v5, 0.0 }
 0x5b1   :  { %1485 = vpow2.f32 %v677_v6  ;;  %803 = vadd.xlane.f32.xlu0 %v802_v7 }
 0x5b7   :  { %v1486_v11 = vpop.eup %1485 }
 0x5b8   :  { %v681_v13 = vsel %vm348_vm2, %v1486_v11, 0.0 }
 0x5b9   :  { %673 = vmax.xlane.f32.xlu0 %v672_v12  ;;  %682 = vadd.xlane.f32.xlu1 %v681_v13 }
 0x5cd   :  { %692 = vrot.lane.b32.xlu0 %v1685_v28, %s1631_s2 }
 0x5d2   :  { %840 = vrot.lane.b32.xlu1 %v1745_v25, %s1630_s0 }
 0x5d5   :  { %974 = vrot.lane.b32.xlu0 %v1745_v25, %s1627_s27 }
 0x5da   :  { %1081 = vrot.lane.b32.xlu1 %v1745_v25, %s1631_s2 }
 0x5dd   :  { %972 = vrot.lane.b32.xlu0 %v1751_v36, %s1627_s27 }
 0x61c   :  { %v801_v14 = vpop.xlane.xlu1 %800 }
 0x61d   :  { %1487 = vrcp.f32 %v801_v14 }
 0x623   :  { %v1488_v18 = vpop.eup %1487 }
 0x624   :  { %v804_v15 = vpop.xlane.xlu0 %803  ;;  %v807_v19 = vmul.f32 %v1488_v18, %v1482_v0 }
 0x625   :  { %1489 = vrcp.f32 %v804_v15 }
 0x62b   :  { %v1490_v28 = vpop.eup %1489 }
 0x62c   :  { %v808_v20 = vmul.f32 %v1490_v28, %v1484_v5  ;;  %v674_v21 = vpop.xlane.xlu0 %673  ;;  %v683_v30 = vpop.xlane.xlu1 %682 }
 0x62d   :  { %v676_v24 = vsub.f32 %v668_v9, %v674_v21 }
 0x62e   :  { %v809_v26 = vpack.c.bf16 %v808_v20, %v807_v19 }
 0x62f   :  { %v679_v27 = vmul.f32 1.442695, %v676_v24 }
 0x630   :  { %1359 = vmatmul.msk.bf16.vlgmr.msrb.gmra.mxu1 %vm348_vm2, %v809_v26 }
 0x631   :  { %1491 = vpow2.f32 %v679_v27 }
 0x632   :  { %1493 = vrcp.f32 %v683_v30 }
 0x637   :  { %v1492_v25 = vpop.eup %1491 }
 0x638   :  { %v684_v29 = vsel %vm348_vm2, %v1492_v25, 0.0  ;;  %v1494_v40 = vpop.eup %1493 }
 0x639   :  { %685 = vadd.xlane.f32.xlu2 %v684_v29  ;;  %v689_v44 = vmul.f32 %v1494_v40, %v1486_v11 }
 0x63f   :  { %v693_v31 = vpop.permute.xlu0 %692 }
 0x640   :  { %705 = vmatpush.bf16.msra.mxu2 %v693_v31 }
 0x644   :  { %v841_v32 = vpop.permute.xlu1 %840 }
 0x645   :  { %v846_v33 = vsel %vm323_vm0, %v841_v32, 0 }
 0x646   :  { %855 = vmatpush.bf16.xpose.msrb.mxu2 %v846_v33 }
 0x647   :  { %v975_v46 = vpop.permute.xlu0 %974 }
 0x648   :  { %v980_v50 = vsel %vm323_vm0, %v975_v46, 0 }
 0x64c   :  { %v1082_v34 = vpop.permute.xlu1 %1081 }
 0x64d   :  { %v1087_v37 = vsel %vm323_vm0, %v1082_v34, 0 }
 0x64e   :  { %1096 = vmatpush.bf16.xpose.msrb.mxu1 %v1087_v37 }
 0x64f   :  { %v973_v52 = vpop.permute.xlu0 %972 }
 0x651   :  { %838 = vrot.lane.b32.xlu2 %v1751_v36, %s1630_s0 }
 0x659   :  { %1079 = vrot.lane.b32.xlu2 %v1751_v36, %s1631_s2 }
 0x6ac   :  { %v686_v38 = vpop.xlane.xlu2 %685 }
 0x6ad   :  { %1495 = vrcp.f32 %v686_v38  ;;  %v828_v39 = vpop.f32.mrf.mxu1 }
 0x6b3   :  { %v1496_v42 = vpop.eup %1495 }
 0x6b4   :  { %v690_v45 = vmul.f32 %v1496_v42, %v1492_v25  ;;  %v839_v36 = vpop.permute.xlu2 %838 }
 0x6b5   :  { %v830_v48 = vpop.f32.mrf.mxu1 }
 0x6b6   :  { %v691_v49 = vpack.c.bf16 %v690_v45, %v689_v44  ;;  %v833_v22 = vpack.c.bf16 %v830_v48, %v828_v39 }
 0x6b8   :  { %1348 = vmatmul.msk.bf16.vlgmr.msra.gmra.mxu2 %vm348_vm2, %v691_v49  ;;  %1379 = vmatmul.msk.bf16.vlgmr.msra.gmra.mxu1 %vm323_vm0, %v833_v22 }
 0x6b9   :  { %989 = vmatpush.bf16.xpose.msra.mxu2 %v980_v50 }
 0x6bc   :  { %v1080_v51 = vpop.permute.xlu2 %1079 }
 0x6c8   :  { %1360 = vmatmul.msk.bf16.vlgmr.msrb.gmra.mxu2 %vm323_vm0, %v839_v36  ;;  %1391 = vmatmul.msk.bf16.vlgmr.msrb.gmra.mxu1 %vm323_vm0, %v1080_v51 }
 0x6d8   :  { %1380 = vmatmul.msk.bf16.vlgmr.msra.gmra.mxu2 %vm323_vm0, %v973_v52 }
 0x735   :  { %v1798_v55 = vpop.f32.mrf.mxu1 }
 0x73b   :  { %v707_v56 = vpop.f32.mrf.mxu2 }
 0x73d   :  { %v1800_v57 = vpop.f32.mrf.mxu1 }
 0x743   :  { %v709_v58 = vpop.f32.mrf.mxu2 }
 0x744   :  { %v712_v59 = vpack.c.bf16 %v709_v58, %v707_v56 }
 0x745   :  { %v1098_v60 = vpop.f32.mrf.mxu1 }
 0x746   :  { %v1103_v61 = vmul.f32 0.17677669, %v1098_v60  ;;  %1357 = vmatmul.msk.bf16.vlgmr.msrb.gmra.mxu3 %vm323_vm0, %v712_v59 }
 0x748   :  { %v1105_v62 = vsel %vm1689_vm1, %v1103_v61, -1e+30 }
 0x749   :  { %v1107_v63 = vsel %vm348_vm2, %v1105_v62, -inf }
 0x74a   :  { %1108 = vmax.xlane.f32.xlu2 %v1107_v63 }
 0x74b   :  { %v857_v0 = vpop.f32.mrf.mxu2 }
 0x74c   :  { %v862_v1 = vmul.f32 0.17677669, %v857_v0 }
 0x74d   :  { %v1100_v2 = vpop.f32.mrf.mxu1 }
 0x74e   :  { %v864_v17 = vsel %vm1689_vm1, %v862_v1, -1e+30  ;;  %v1104_v4 = vmul.f32 0.17677669, %v1100_v2 }
 0x74f   :  { %v866_v3 = vsel %vm348_vm2, %v864_v17, -inf }
 0x750   :  { %867 = vmax.xlane.f32.xlu1 %v866_v3  ;;  %v1106_v7 = vsel %vm1696_vm3, %v1104_v4, -1e+30 }
 0x751   :  { %v1110_v11 = vsel %vm348_vm2, %v1106_v7, -inf }
 0x753   :  { %v859_v5 = vpop.f32.mrf.mxu2 }
 0x754   :  { %v863_v6 = vmul.f32 0.17677669, %v859_v5 }
 0x756   :  { %v865_v8 = vsel %vm1696_vm3, %v863_v6, -1e+30 }
 0x757   :  { %v869_v9 = vsel %vm348_vm2, %v865_v8, -inf }
 0x758   :  { %870 = vmax.xlane.f32.xlu0 %v869_v9  ;;  %1111 = vmax.xlane.f32.xlu1 %v1110_v11 }
 0x75b   :  { %v991_v12 = vpop.f32.mrf.mxu2 }
 0x75c   :  { %v996_v13 = vmul.f32 0.17677669, %v991_v12 }
 0x75e   :  { %v998_v14 = vsel %vm1689_vm1, %v996_v13, -1e+30 }
 0x75f   :  { %v1000_v15 = vsel %vm348_vm2, %v998_v14, -inf }
 0x760   :  { %1001 = vmax.xlane.f32.xlu0 %v1000_v15 }
 0x763   :  { %v993_v16 = vpop.f32.mrf.mxu2 }
 0x764   :  { %v997_v18 = vmul.f32 0.17677669, %v993_v16 }
 0x766   :  { %v999_v28 = vsel %vm1696_vm3, %v997_v18, -1e+30 }
 0x767   :  { %v1003_v19 = vsel %vm348_vm2, %v999_v28, -inf }
 0x768   :  { %1004 = vmax.xlane.f32.xlu2 %v1003_v19  ;;  %v1439_v19 = vld [vmem:[#allocation7 + $0x18] sm:$0xff] }
 0x769   :  { %935 = vmatpush.bf16.msra.mxu0 %v1439_v19 }
 0x780   :  { %889 = vrot.lane.b32.xlu2 %v1713_v10, %s1630_s0 }
 0x7bd   :  { %v1109_v34 = vpop.xlane.xlu2 %1108 }
 0x7be   :  { %v1113_v40 = vsub.f32 %v1105_v62, %v1109_v34 }
 0x7c0   :  { %v1115_v45 = vmul.f32 1.442695, %v1113_v40 }
 0x7c3   :  { %v868_v20 = vpop.xlane.xlu1 %867 }
 0x7c4   :  { %v872_v21 = vsub.f32 %v864_v17, %v868_v20  ;;  %v1438_v20 = vld [vmem:[#allocation7 + $0x10] sm:$0xff] }
 0x7c5   :  { %936 = vmatpush.bf16.msra.mxu0 %v1438_v20 }
 0x7c6   :  { %v874_v23 = vmul.f32 1.442695, %v872_v21 }
 0x7c8   :  { %1497 = vpow2.f32 %v874_v23  ;;  %v1443_v23 = vld [vmem:[#allocation7 + $0x38] sm:$0xff] }
 0x7c9   :  { %v741_v24 = vpop.f32.mrf.mxu3 }
 0x7ca   :  { %v746_v26 = vadd.f32 %v741_v24, %v1755_v43  ;;  %v1441_v24 = vld [vmem:[#allocation7 + $0x28] sm:$0xff] }
 0x7cb   :  { %v871_v41 = vpop.xlane.xlu0 %870  ;;  %v1112_v46 = vpop.xlane.xlu1 %1111  ;;  %1069 = vmatpush.bf16.msrb.mxu0 %v1441_v24 }
 0x7cc   :  { %v751_v27 = vadd.f32 %v1826_v35, %v746_v26  ;;  %v873_v25 = vsub.f32 %v865_v8, %v871_v41  ;;  %v1442_v26 = vld [vmem:[#allocation7 + $0x30] sm:$0xff] }
 0x7ce   :  { %v1498_v29 = vpop.eup %1497  ;;  %753 = vst [vmem:[#allocation8] sm:$0xff] %v751_v27  ;;  %v876_v30 = vmul.f32 1.442695, %v873_v25  ;;  %v1440_v25 = vld [vmem:[#allocation7 + $0x20] sm:$0xff] }
 0x7cf   :  { %v878_v31 = vsel %vm348_vm2, %v1498_v29, 0.0  ;;  %1070 = vmatpush.bf16.msrb.mxu0 %v1440_v25 }
 0x7d0   :  { %1499 = vpow2.f32 %v876_v30  ;;  %879 = vadd.xlane.f32.xlu1 %v878_v31 }
 0x7d1   :  { %v743_v32 = vpop.f32.mrf.mxu3 }
 0x7d2   :  { %v747_v33 = vadd.f32 %v743_v32, %v1757_v47  ;;  %v1114_v47 = vsub.f32 %v1106_v7, %v1112_v46 }
 0x7d3   :  { %v1002_v37 = vpop.xlane.xlu0 %1001 }
 0x7d4   :  { %v752_v38 = vadd.f32 %v1826_v35, %v747_v33  ;;  %v1006_v39 = vsub.f32 %v998_v14, %v1002_v37  ;;  %v1117_v51 = vmul.f32 1.442695, %v1114_v47 }
 0x7d6   :  { %v1500_v43 = vpop.eup %1499  ;;  %754 = vst [vmem:[#allocation8 + $0x8] sm:$0xff] %v752_v38  ;;  %v1008_v42 = vmul.f32 1.442695, %v1006_v39 }
 0x7d7   :  { %v881_v44 = vsel %vm348_vm2, %v1500_v43, 0.0 }
 0x7d8   :  { %1501 = vpow2.f32 %v1008_v42  ;;  %882 = vadd.xlane.f32.xlu0 %v881_v44 }
 0x7d9   :  { %1503 = vpow2.f32 %v1115_v45 }
 0x7db   :  { %v1005_v48 = vpop.xlane.xlu2 %1004 }
 0x7dc   :  { %v1007_v49 = vsub.f32 %v999_v28, %v1005_v48 }
 0x7de   :  { %v1502_v22 = vpop.eup %1501  ;;  %v1010_v50 = vmul.f32 1.442695, %v1007_v49 }
 0x7df   :  { %v1012_v36 = vsel %vm348_vm2, %v1502_v22, 0.0  ;;  %v1504_v53 = vpop.eup %1503 }
 0x7e0   :  { %1505 = vpow2.f32 %v1010_v50  ;;  %1013 = vadd.xlane.f32.xlu1 %v1012_v36  ;;  %v1119_v58 = vsel %vm348_vm2, %v1504_v53, 0.0 }
 0x7e1   :  { %1507 = vpow2.f32 %v1117_v51 }
 0x7e3   :  { %v890_v52 = vpop.permute.xlu2 %889 }
 0x7e4   :  { %902 = vmatpush.bf16.msra.mxu3 %v890_v52 }
 0x7e6   :  { %v1506_v54 = vpop.eup %1505 }
 0x7e7   :  { %v1015_v56 = vsel %vm348_vm2, %v1506_v54, 0.0  ;;  %v1508_v59 = vpop.eup %1507 }
 0x7e8   :  { %1016 = vadd.xlane.f32.xlu0 %v1015_v56  ;;  %1120 = vadd.xlane.f32.xlu1 %v1119_v58  ;;  %v1122_v60 = vsel %vm348_vm2, %v1508_v59, 0.0 }
 0x7f0   :  { %1123 = vadd.xlane.f32.xlu0 %v1122_v60 }
 0x801   :  { %1130 = vrot.lane.b32.xlu1 %v1713_v10, %s1631_s2 }
 0x804   :  { %1023 = vrot.lane.b32.xlu0 %v1713_v10, %s1627_s27 }
 0x843   :  { %v880_v61 = vpop.xlane.xlu1 %879 }
 0x844   :  { %1509 = vrcp.f32 %v880_v61 }
 0x84a   :  { %v1510_v63 = vpop.eup %1509 }
 0x84b   :  { %v883_v62 = vpop.xlane.xlu0 %882  ;;  %v886_v1 = vmul.f32 %v1510_v63, %v1498_v29 }
 0x84c   :  { %1511 = vrcp.f32 %v883_v62 }
 0x852   :  { %v1512_v0 = vpop.eup %1511 }
 0x853   :  { %v887_v2 = vmul.f32 %v1512_v0, %v1500_v43  ;;  %v1014_v4 = vpop.xlane.xlu1 %1013 }
 0x855   :  { %v888_v17 = vpack.c.bf16 %v887_v2, %v886_v1 }
 0x857   :  { %1361 = vmatmul.msk.bf16.vlgmr.msra.gmra.mxu3 %vm348_vm2, %v888_v17 }
 0x85b   :  { %v1017_v3 = vpop.xlane.xlu0 %1016  ;;  %v1121_v6 = vpop.xlane.xlu1 %1120 }
 0x863   :  { %v1124_v5 = vpop.xlane.xlu0 %1123 }
 0x864   :  { %1513 = vrcp.f32 %v1124_v5 }
 0x865   :  { %1515 = vrcp.f32 %v1121_v6 }
 0x866   :  { %1517 = vrcp.f32 %v1017_v3 }
 0x867   :  { %1519 = vrcp.f32 %v1014_v4 }
 0x86a   :  { %v1514_v10 = vpop.eup %1513 }
 0x86b   :  { %v1516_v7 = vpop.eup %1515  ;;  %v1128_v9 = vmul.f32 %v1514_v10, %v1508_v59 }
 0x86c   :  { %v1518_v8 = vpop.eup %1517  ;;  %v1127_v12 = vmul.f32 %v1516_v7, %v1504_v53 }
 0x86d   :  { %v1520_v11 = vpop.eup %1519  ;;  %v1021_v14 = vmul.f32 %v1518_v8, %v1506_v54 }
 0x86e   :  { %v1129_v15 = vpack.c.bf16 %v1128_v9, %v1127_v12  ;;  %v1020_v16 = vmul.f32 %v1520_v11, %v1502_v22 }
 0x870   :  { %v1022_v28 = vpack.c.bf16 %v1021_v14, %v1020_v16 }
 0x873   :  { %v1131_v13 = vpop.permute.xlu1 %1130 }
 0x874   :  { %1143 = vmatpush.bf16.msrb.mxu2 %v1131_v13 }
 0x876   :  { %v1024_v18 = vpop.permute.xlu0 %1023 }
 0x877   :  { %1036 = vmatpush.bf16.msrb.mxu3 %v1024_v18  ;;  %1392 = vmatmul.msk.bf16.vlgmr.msrb.gmra.mxu2 %vm348_vm2, %v1129_v15 }
 0x87a   :  { %1381 = vmatmul.msk.bf16.vlgmr.msrb.gmra.mxu3 %vm348_vm2, %v1022_v28 }
 0x87b   :  { %1176 = vmatpush.bf16.msra.mxu3 %v1443_v23 }
 0x87f   :  { %1177 = vmatpush.bf16.msra.mxu3 %v1442_v26 }
 0x8da   :  { %v904_v21 = vpop.f32.mrf.mxu3 }
 0x8e2   :  { %v906_v41 = vpop.f32.mrf.mxu3 }
 0x8e3   :  { %v909_v27 = vpack.c.bf16 %v906_v41, %v904_v21 }
 0x8e5   :  { %1370 = vmatmul.msk.bf16.vlgmr.msra.gmra.mxu0 %vm323_vm0, %v909_v27 }
 0x8fa   :  { %v1145_v29 = vpop.f32.mrf.mxu2 }
 0x8fd   :  { %v1038_v30 = vpop.f32.mrf.mxu3 }
 0x902   :  { %v1147_v31 = vpop.f32.mrf.mxu2 }
 0x903   :  { %v1150_v32 = vpack.c.bf16 %v1147_v31, %v1145_v29 }
 0x905   :  { %v1040_v33 = vpop.f32.mrf.mxu3  ;;  %1401 = vmatmul.msk.bf16.vlgmr.msra.gmra.mxu3 %vm323_vm0, %v1150_v32 }
 0x906   :  { %v1043_v34 = vpack.c.bf16 %v1040_v33, %v1038_v30 }
 0x908   :  { %1390 = vmatmul.msk.bf16.vlgmr.msrb.gmra.mxu0 %vm323_vm0, %v1043_v34 }
 0x962   :  { %v938_v37 = vpop.f32.mrf.mxu0 }
 0x963   :  { %v968_v39 = vadd.f32 %v1798_v55, %v938_v37 }
 0x96a   :  { %v940_v38 = vpop.f32.mrf.mxu0 }
 0x96b   :  { %v970_v46 = vadd.f32 %v1800_v57, %v940_v38 }
 0x985   :  { %v1072_v43 = vpop.f32.mrf.mxu0 }
 0x986   :  { %v1077_v40 = vadd.f32 %v1072_v43, %v968_v39 }
 0x988   :  { %v1179_v42 = vpop.f32.mrf.mxu3 }
 0x989   :  { %v1184_v44 = vadd.f32 %v1179_v42, %v1077_v40 }
 0x98b   :  { %v1186_v45 = vadd.f32 %v1826_v35, %v1184_v44 }
 0x98d   :  { %1188 = vst [vmem:[#allocation8 + $0x10] sm:$0xff] %v1186_v45  ;;  %v1074_v48 = vpop.f32.mrf.mxu0 }
 0x98e   :  { %v1078_v49 = vadd.f32 %v1074_v48, %v970_v46 }
 0x990   :  { %v1181_v22 = vpop.f32.mrf.mxu3 }
 0x991   :  { %v1185_v47 = vadd.f32 %v1181_v22, %v1078_v49 }
 0x993   :  { %v1187_v55 = vadd.f32 %v1826_v35, %v1185_v47 }
 0x995   :  { %1189 = vst [vmem:[#allocation8 + $0x18] sm:$0xff] %v1187_v55 }
 0x996   :  { %1202 = dma.vmem_to_hbm [thread:$0]  %s1195_s9, 512, %s1197_s12, [#allocation4], %s1633_s13, %s1633_s13, %s1634_s14  }
 0x997   :  { %1621 = dma.done.wait [#allocation4], 512  }
 0x998   :  { %1622 = vsyncadd [#allocation4], 4294966784 }
 0x999   :  { %1207 = vsyncpa [#allocation3], 1 }
 0x99a   :  { %1208 = vsyncpa [#allocation6], 1 }
 0x99b   :  { %1209 = vsyncpa [#allocation4], 1 }

</bundles_post_ra>
